<compile_context>
chip_gen: v6e
topology: v6e:2x2x1
jax: 0.10.0
libtpu: 0.0.40
codegen_flags: <defaults>
</compile_context>

<pallas_src>
import functools

import jax
import jax.numpy as jnp
from jax import lax
from jax.experimental import pallas as pl
from jax.experimental.pallas import tpu as pltpu


def _round_up(x, m):
    return (x + m - 1) // m * m


def rnn_policy_kernel(obs_ref, mask_ref,
                      wenc_ref, benc_ref,
                      wih_ref, whh_ref, blstm_ref,
                      whead_ref, bhead_ref,
                      heads_ref, hN_ref, cN_ref,
                      gx_sc, mb_sc, hall_sc, h_sc, c_sc,
                      *, tc, batch, hidden_pad, unroll):
    Tc, B, Hp = tc, batch, hidden_pad
    chunk = pl.program_id(0)

    # ---- chunk-0 init of the carried LSTM state (h0 = c0 = 0, PyTorch) ----
    @pl.when(chunk == 0)
    def _():
        h_sc[...] = jnp.zeros_like(h_sc)
        c_sc[...] = jnp.zeros_like(c_sc)

    # ---- hoisted non-recurrent compute for this chunk (bf16 MXU, f32 acc) ----
    e = jnp.tanh(
        jnp.dot(obs_ref[...], wenc_ref[...],
                preferred_element_type=jnp.float32) + benc_ref[...])   # (Tc*B, Hp) f32
    gx = (jnp.dot(e.astype(jnp.bfloat16), wih_ref[...],
                  preferred_element_type=jnp.float32)
          + blstm_ref[...])                                            # (Tc*B, 4Hp) f32
    gx_sc[...] = gx.reshape(Tc, B, 4 * Hp)

    # mask lane-broadcast hoisted out of the serial loop (once per chunk)
    mb_sc[...] = jnp.broadcast_to(mask_ref[...], (Tc, B, Hp))

    whh = whh_ref[...]                                                 # (Hp, 4Hp) f32

    # ---- serial recurrence: only h @ W_hh + gate math stays per-step ----
    def step(t, carry):
        h, c = carry
        m = mb_sc[t]                      # (B, Hp); all-ones == no masking
        h = h * m
        c = c * m
        gates = gx_sc[t] + jnp.dot(h, whh, preferred_element_type=jnp.float32)
        # PyTorch gate order [i, f, g, o]; every gate slice is 128-lane aligned.
        i_g = jax.nn.sigmoid(gates[:, 0 * Hp:1 * Hp])
        f_g = jax.nn.sigmoid(gates[:, 1 * Hp:2 * Hp])
        g_g = jnp.tanh(gates[:, 2 * Hp:3 * Hp])
        o_g = jax.nn.sigmoid(gates[:, 3 * Hp:4 * Hp])
        c = f_g * c + i_g * g_g
        h = o_g * jnp.tanh(c)
        hall_sc[t] = h.astype(hall_sc.dtype)   # bf16 stash for the head matmul
        return h, c

    h, c = lax.fori_loop(0, Tc, step, (h_sc[...], c_sc[...]), unroll=unroll)

    h_sc[...] = h                          # carry to next chunk
    c_sc[...] = c
    hN_ref[...] = h                        # constant out block: last chunk wins
    cN_ref[...] = c

    # ---- fused pi/v heads over the whole chunk, lane-dense 128-wide slab ----
    h_all = hall_sc[...].reshape(Tc * B, Hp)
    heads_ref[...] = (
        jnp.dot(h_all, whead_ref[...], preferred_element_type=jnp.float32)
        + bhead_ref[...])                  # (Tc*B, 128): [:,0:2]=logits, [:,2]=v


def _choose_chunk(T, Bp, Dp, Hp, head_w, budget_bytes, max_chunk=None):
    """Largest divisor of T whose chunk-resident VMEM fits the budget."""
    cap = T if max_chunk is None else max(1, min(T, max_chunk))
    best = 1
    for tc in range(1, cap + 1):
        if T % tc:
            continue
        streamed = (tc * Bp * Dp * 2            # obs block (bf16)
                    + tc * Bp * 1 * 4           # masks block
                    + tc * Bp * head_w * 4)     # heads out block
        scratch = (tc * Bp * 4 * Hp * 4         # gx slab
                   + tc * Bp * Hp * 4           # broadcast-mask slab
                   + tc * Bp * Hp * 2           # h_all slab (bf16)
                   + 2 * Bp * Hp * 4)           # h/c carries
        weights = (Dp * Hp * 2 + Hp * 4 * Hp * (2 + 4)
                   + Hp * head_w * 2 + (Hp + 4 * Hp + head_w) * 4)
        if 2 * streamed + scratch + weights <= budget_bytes:   # x2: double buf
            best = tc
    return best


def rnn_policy_forward(obs, params, masks=None, *, max_chunk=None,
                       vmem_budget_bytes=24 * 1024 * 1024):
    """obs: (T, B, obs_dim) or (B, obs_dim).  Returns (logits, values, (hN, cN))."""
    single_step = obs.ndim == 2
    if single_step:
        obs = obs[None]
        if masks is not None:
            masks = masks.reshape(1, -1)

    T, B, D = obs.shape
    H = params["W_enc"].shape[0]
    Hp = _round_up(H, 128)                 # lane-aligned hidden width
    Dp = _round_up(D, 128)                 # lane-aligned obs width
    Bp = _round_up(B, 8)                   # sublane-aligned batch
    HEAD_W = 128                           # lane-dense head-output width (>=3)
    f32, bf16 = jnp.float32, jnp.bfloat16

    # -- weight plumbing: transpose to x@W form, zero-pad to aligned shapes.
    #    Padded lanes of h/c provably stay 0 (zero-padded W rows/cols). --
    wenc = jnp.zeros((Dp, Hp), f32).at[:D, :H].set(params["W_enc"].T).astype(bf16)
    benc = jnp.zeros((1, Hp), f32).at[:, :H].set(params["b_enc"])

    def pad_lstm_w(w):                     # (4H, H) -> (Hp, 4*Hp), gate-aligned
        w4 = w.T.reshape(H, 4, H)
        w4 = jnp.pad(w4, ((0, Hp - H), (0, 0), (0, Hp - H)))
        return w4.reshape(Hp, 4 * Hp).astype(f32)

    wih = pad_lstm_w(params["W_ih"]).astype(bf16)
    whh = pad_lstm_w(params["W_hh"])       # recurrence stays f32
    blstm = jnp.pad((params["b_ih"] + params["b_hh"]).reshape(4, H),
                    ((0, 0), (0, Hp - H))).reshape(1, 4 * Hp).astype(f32)

    # fused pi/v head: columns [0:2] = pi logits, [2] = value, rest zero pad
    whead = jnp.zeros((Hp, HEAD_W), f32)
    whead = whead.at[:H, 0:2].set(params["W_pi"].T)
    whead = whead.at[:H, 2:3].set(params["W_v"].T)
    whead = whead.astype(bf16)
    bhead = jnp.zeros((1, HEAD_W), f32)
    bhead = bhead.at[0, 0:2].set(params["b_pi"])
    bhead = bhead.at[0, 2:3].set(params["b_v"])

    obs_p = jnp.zeros((T, Bp, Dp), f32).at[:, :B, :D].set(obs.astype(f32))
    obs_flat = obs_p.reshape(T * Bp, Dp).astype(bf16)

    masks_p = jnp.ones((T, Bp, 1), f32)
    if masks is not None:
        masks_p = masks_p.at[:, :B, 0].set(masks.reshape(T, B).astype(f32))

    Tc = _choose_chunk(T, Bp, Dp, Hp, HEAD_W, vmem_budget_bytes, max_chunk)
    nchunks = T // Tc
    unroll = min(8, Tc)

    kernel = functools.partial(rnn_policy_kernel, tc=Tc, batch=Bp,
                               hidden_pad=Hp, unroll=unroll)

    in_specs = [
        pl.BlockSpec((Tc * Bp, Dp), lambda c: (c, 0)),        # obs chunk
        pl.BlockSpec((Tc, Bp, 1), lambda c: (c, 0, 0)),       # masks chunk
        pl.BlockSpec((Dp, Hp), lambda c: (0, 0)),             # W_enc
        pl.BlockSpec((1, Hp), lambda c: (0, 0)),              # b_enc
        pl.BlockSpec((Hp, 4 * Hp), lambda c: (0, 0)),         # W_ih
        pl.BlockSpec((Hp, 4 * Hp), lambda c: (0, 0)),         # W_hh
        pl.BlockSpec((1, 4 * Hp), lambda c: (0, 0)),          # b_lstm
        pl.BlockSpec((Hp, HEAD_W), lambda c: (0, 0)),         # W_head
        pl.BlockSpec((1, HEAD_W), lambda c: (0, 0)),          # b_head
    ]
    out_specs = [
        pl.BlockSpec((Tc * Bp, HEAD_W), lambda c: (c, 0)),    # heads slab
        pl.BlockSpec((Bp, Hp), lambda c: (0, 0)),             # hN
        pl.BlockSpec((Bp, Hp), lambda c: (0, 0)),             # cN
    ]
    scratch_shapes = [
        pltpu.VMEM((Tc, Bp, 4 * Hp), f32),    # gx (input-side gates) per chunk
        pltpu.VMEM((Tc, Bp, Hp), f32),        # broadcast masks per chunk
        pltpu.VMEM((Tc, Bp, Hp), bf16),       # per-step hidden states
        pltpu.VMEM((Bp, Hp), f32),            # carried h
        pltpu.VMEM((Bp, Hp), f32),            # carried c
    ]

    heads, hN, cN = pl.pallas_call(
        kernel,
        out_shape=[
            jax.ShapeDtypeStruct((T * Bp, HEAD_W), f32),
            jax.ShapeDtypeStruct((Bp, Hp), f32),
            jax.ShapeDtypeStruct((Bp, Hp), f32),
        ],
        grid_spec=pltpu.PrefetchScalarGridSpec(
            num_scalar_prefetch=0,
            grid=(nchunks,),
            in_specs=in_specs,
            out_specs=out_specs,
            scratch_shapes=scratch_shapes),
        compiler_params=pltpu.CompilerParams(
            dimension_semantics=("arbitrary",),
            vmem_limit_bytes=48 * 1024 * 1024),
    )(obs_flat, masks_p, wenc, benc, wih, whh, blstm, whead, bhead)

    heads = heads.reshape(T, Bp, HEAD_W)
    logits = heads[:, :B, 0:2]
    values = heads[:, :B, 2]                 # mirrors .squeeze(-1)
    hN = hN[None, :B, :H]
    cN = cN[None, :B, :H]
    if single_step:
        logits, values = logits[0], values[0]
    return logits, values, (hN, cN)


# ---------------- pure-JAX reference for correctness check ----------------
def reference_forward(obs, params, masks=None):
    T, B, D = obs.shape
    H = params["W_enc"].shape[0]
    e = jnp.tanh(obs.reshape(T * B, D) @ params["W_enc"].T + params["b_enc"])
    e = e.reshape(T, B, H)
    b = params["b_ih"] + params["b_hh"]
    if masks is None:
        masks = jnp.ones((T, B), jnp.float32)
    masks = masks.reshape(T, B, 1)

    def step(carry, inp):
        h, c = carry
        x_t, m_t = inp
        h = h * m_t
        c = c * m_t
        gates = x_t @ params["W_ih"].T + h @ params["W_hh"].T + b
        i = jax.nn.sigmoid(gates[:, 0 * H:1 * H])
        f = jax.nn.sigmoid(gates[:, 1 * H:2 * H])
        g = jnp.tanh(gates[:, 2 * H:3 * H])
        o = jax.nn.sigmoid(gates[:, 3 * H:4 * H])
        c = f * c + i * g
        h = o * jnp.tanh(c)
        return (h, c), h

    (hN, cN), out = jax.lax.scan(
        step, (jnp.zeros((B, H)), jnp.zeros((B, H))), (e, masks))
    logits = out @ params["W_pi"].T + params["b_pi"]
    values = (out @ params["W_v"].T + params["b_v"])[..., 0]
    return logits, values, (hN[None], cN[None])


def init_params(key, obs_dim, hidden_size):
    ks = jax.random.split(key, 10)
    H = hidden_size
    u = lambda k, shape, bound: jax.random.uniform(
        k, shape, jnp.float32, -bound, bound)
    s_enc = 1.0 / jnp.sqrt(obs_dim)
    s_h = 1.0 / jnp.sqrt(H)
    return {
        "W_enc": u(ks[0], (H, obs_dim), s_enc),
        "b_enc": u(ks[1], (H,), s_enc),
        "W_ih": u(ks[2], (4 * H, H), s_h),
        "W_hh": u(ks[3], (4 * H, H), s_h),
        "b_ih": u(ks[4], (4 * H,), s_h),
        "b_hh": u(ks[5], (4 * H,), s_h),
        "W_pi": u(ks[6], (2, H), s_h),
        "b_pi": u(ks[7], (2,), s_h),
        "W_v": u(ks[8], (1, H), s_h),
        "b_v": u(ks[9], (1,), s_h),
    }


if __name__ == "__main__":
    T, B, OBS_DIM, HIDDEN = 8, 8, 16, 32

    key = jax.random.PRNGKey(0)
    k_obs, k_par, k_msk = jax.random.split(key, 3)
    obs = jax.random.normal(k_obs, (T, B, OBS_DIM), dtype=jnp.float32)
    params = init_params(k_par, OBS_DIM, HIDDEN)

    # bf16 hoisted matmuls -> loosened tolerance vs the f32 reference
    ATOL = RTOL = 2e-2

    # ---- unmasked path; max_chunk=4 exercises the 2-chunk carried-state grid ----
    logits, values, (hN, cN) = rnn_policy_forward(obs, params, max_chunk=4)
    jax.block_until_ready((logits, values, hN, cN))

    r_logits, r_values, (r_hN, r_cN) = reference_forward(obs, params)
    assert logits.shape == (T, B, 2) and values.shape == (T, B)
    assert hN.shape == (1, B, HIDDEN) and cN.shape == (1, B, HIDDEN)
    for a, b in ((logits, r_logits), (values, r_values),
                 (hN, r_hN), (cN, r_cN)):
        assert jnp.allclose(a, b, atol=ATOL, rtol=RTOL), "mismatch vs reference"

    # ---- masked path (episode resets); default chunking (single chunk here) ----
    masks = (jax.random.uniform(k_msk, (T, B)) > 0.3).astype(jnp.float32)
    m_logits, m_values, (m_hN, m_cN) = rnn_policy_forward(obs, params,
                                                          masks=masks)
    jax.block_until_ready((m_logits, m_values, m_hN, m_cN))
    rm_logits, rm_values, (rm_hN, rm_cN) = reference_forward(obs, params,
                                                             masks=masks)
    for a, b in ((m_logits, rm_logits), (m_values, rm_values),
                 (m_hN, rm_hN), (m_cN, rm_cN)):
        assert jnp.allclose(a, b, atol=ATOL, rtol=RTOL), "masked mismatch"

    # TODO(synk): evaluate_actions (Categorical log_prob/entropy) is plain JAX
    #             on the returned logits; GRU variant not implemented (module
    #             defaults to LSTM).
    print("KERNEL_OK")
</pallas_src>

<mosaic_0001>
module attributes {stable_mosaic.version = 11 : i64} {
  func.func @rnn_policy_kernel(%arg0: i32, %arg1: memref<32x128xbf16, #tpu.memory_space<vmem>>, %arg2: memref<4x8x1xf32, #tpu.memory_space<vmem>>, %arg3: memref<128x128xbf16, #tpu.memory_space<vmem>>, %arg4: memref<1x128xf32, #tpu.memory_space<vmem>>, %arg5: memref<128x512xbf16, #tpu.memory_space<vmem>>, %arg6: memref<128x512xf32, #tpu.memory_space<vmem>>, %arg7: memref<1x512xf32, #tpu.memory_space<vmem>>, %arg8: memref<128x128xbf16, #tpu.memory_space<vmem>>, %arg9: memref<1x128xf32, #tpu.memory_space<vmem>>, %arg10: memref<32x128xf32, #tpu.memory_space<vmem>>, %arg11: memref<8x128xf32, #tpu.memory_space<vmem>>, %arg12: memref<8x128xf32, #tpu.memory_space<vmem>>, %arg13: memref<4x8x512xf32, #tpu.memory_space<vmem>>, %arg14: memref<4x8x128xf32, #tpu.memory_space<vmem>>, %arg15: memref<4x8x128xbf16, #tpu.memory_space<vmem>>, %arg16: memref<8x128xf32, #tpu.memory_space<vmem>>, %arg17: memref<8x128xf32, #tpu.memory_space<vmem>>) attributes {dimension_semantics = [#tpu.dimension_semantics<arbitrary>], iteration_bounds = array<i64: 2>, scalar_prefetch = 0 : i64, scratch_operands = 5 : i64, tpu.core_type = #tpu.core_type<tc>, window_params = [{transform_indices = @transform_0, window_bounds = array<i64: 32, 128>}, {transform_indices = @transform_1, window_bounds = array<i64: 4, 8, 1>}, {pipeline_mode = #tpu.pipeline_mode<synchronous>, transform_indices = @transform_2, window_bounds = array<i64: 128, 128>}, {pipeline_mode = #tpu.pipeline_mode<synchronous>, transform_indices = @transform_3, window_bounds = array<i64: 1, 128>}, {pipeline_mode = #tpu.pipeline_mode<synchronous>, transform_indices = @transform_4, window_bounds = array<i64: 128, 512>}, {pipeline_mode = #tpu.pipeline_mode<synchronous>, transform_indices = @transform_5, window_bounds = array<i64: 128, 512>}, {pipeline_mode = #tpu.pipeline_mode<synchronous>, transform_indices = @transform_6, window_bounds = array<i64: 1, 512>}, {pipeline_mode = #tpu.pipeline_mode<synchronous>, transform_indices = @transform_7, window_bounds = array<i64: 128, 128>}, {pipeline_mode = #tpu.pipeline_mode<synchronous>, transform_indices = @transform_8, window_bounds = array<i64: 1, 128>}, {transform_indices = @transform_9, window_bounds = array<i64: 32, 128>}, {pipeline_mode = #tpu.pipeline_mode<synchronous>, transform_indices = @transform_10, window_bounds = array<i64: 8, 128>}, {pipeline_mode = #tpu.pipeline_mode<synchronous>, transform_indices = @transform_11, window_bounds = array<i64: 8, 128>}]} {
    %c0_i32 = arith.constant 0 : i32
    %0 = arith.cmpi eq, %arg0, %c0_i32 : i32
    %1 = arith.extui %0 : i1 to i32
    %c0_i32_0 = arith.constant 0 : i32
    %2 = arith.cmpi ne, %1, %c0_i32_0 : i32
    scf.if %2 {
      %cst_85 = arith.constant 0.000000e+00 : f32
      %197 = vector.broadcast %cst_85 : f32 to vector<8x128xf32>
      %c0_86 = arith.constant 0 : index
      %c0_87 = arith.constant 0 : index
      %198 = vector.load %arg16[%c0_86, %c0_87] : memref<8x128xf32, #tpu.memory_space<vmem>>, vector<8x128xf32>
      tpu.vector_store %arg16[%c0_86, %c0_87], %197 {strides = array<i32>} : memref<8x128xf32, #tpu.memory_space<vmem>>, vector<8x128xf32>,
      %cst_88 = arith.constant 0.000000e+00 : f32
      %199 = vector.broadcast %cst_88 : f32 to vector<8x128xf32>
      %c0_89 = arith.constant 0 : index
      %c0_90 = arith.constant 0 : index
      %200 = vector.load %arg17[%c0_89, %c0_90] : memref<8x128xf32, #tpu.memory_space<vmem>>, vector<8x128xf32>
      tpu.vector_store %arg17[%c0_89, %c0_90], %199 {strides = array<i32>} : memref<8x128xf32, #tpu.memory_space<vmem>>, vector<8x128xf32>,
    } else {
    }
    %c0 = arith.constant 0 : index
    %c0_1 = arith.constant 0 : index
    %3 = vector.load %arg1[%c0, %c0_1] : memref<32x128xbf16, #tpu.memory_space<vmem>>, vector<32x128xbf16>
    %c0_2 = arith.constant 0 : index
    %c0_3 = arith.constant 0 : index
    %4 = vector.load %arg3[%c0_2, %c0_3] : memref<128x128xbf16, #tpu.memory_space<vmem>>, vector<128x128xbf16>
    %cst = arith.constant dense<0.000000e+00> : vector<32x128xf32>
    %5 = tpu.matmul %3, %4, %cst {dimension_numbers = #tpu.dot_dimension_numbers<[1], [0], [0], [1], [0, 0, 1, 1], [], []>} : vector<32x128xbf16>, vector<128x128xbf16>, vector<32x128xf32> -> vector<32x128xf32>
    %c0_4 = arith.constant 0 : index
    %c0_5 = arith.constant 0 : index
    %6 = vector.load %arg4[%c0_4, %c0_5] : memref<1x128xf32, #tpu.memory_space<vmem>>, vector<1x128xf32>
    %7 = vector.broadcast %6 : vector<1x128xf32> to vector<32x128xf32>
    %8 = arith.addf %5, %7 : vector<32x128xf32>
    %9 = math.tanh %8 : vector<32x128xf32>
    %10 = arith.truncf %9 : vector<32x128xf32> to vector<32x128xbf16>
    %c0_6 = arith.constant 0 : index
    %c0_7 = arith.constant 0 : index
    %11 = vector.load %arg5[%c0_6, %c0_7] : memref<128x512xbf16, #tpu.memory_space<vmem>>, vector<128x512xbf16>
    %cst_8 = arith.constant dense<0.000000e+00> : vector<32x512xf32>
    %12 = tpu.matmul %10, %11, %cst_8 {dimension_numbers = #tpu.dot_dimension_numbers<[1], [0], [0], [1], [0, 0, 1, 1], [], []>} : vector<32x128xbf16>, vector<128x512xbf16>, vector<32x512xf32> -> vector<32x512xf32>
    %c0_9 = arith.constant 0 : index
    %c0_10 = arith.constant 0 : index
    %13 = vector.load %arg7[%c0_9, %c0_10] : memref<1x512xf32, #tpu.memory_space<vmem>>, vector<1x512xf32>
    %14 = vector.broadcast %13 : vector<1x512xf32> to vector<32x512xf32>
    %15 = arith.addf %12, %14 : vector<32x512xf32>
    %16 = vector.shape_cast %15 : vector<32x512xf32> to vector<4x8x512xf32>
    %c0_11 = arith.constant 0 : index
    %c0_12 = arith.constant 0 : index
    %c0_13 = arith.constant 0 : index
    %17 = vector.load %arg13[%c0_11, %c0_12, %c0_13] : memref<4x8x512xf32, #tpu.memory_space<vmem>>, vector<4x8x512xf32>
    tpu.vector_store %arg13[%c0_11, %c0_12, %c0_13], %16 {strides = array<i32>} : memref<4x8x512xf32, #tpu.memory_space<vmem>>, vector<4x8x512xf32>,
    %c0_14 = arith.constant 0 : index
    %c0_15 = arith.constant 0 : index
    %c0_16 = arith.constant 0 : index
    %18 = vector.load %arg2[%c0_14, %c0_15, %c0_16] : memref<4x8x1xf32, #tpu.memory_space<vmem>>, vector<4x8x1xf32>
    %19 = vector.shape_cast %18 : vector<4x8x1xf32> to vector<4x8x1xf32>
    %20 = vector.broadcast %19 : vector<4x8x1xf32> to vector<4x8x128xf32>
    %c0_17 = arith.constant 0 : index
    %c0_18 = arith.constant 0 : index
    %c0_19 = arith.constant 0 : index
    %21 = vector.load %arg14[%c0_17, %c0_18, %c0_19] : memref<4x8x128xf32, #tpu.memory_space<vmem>>, vector<4x8x128xf32>
    tpu.vector_store %arg14[%c0_17, %c0_18, %c0_19], %20 {strides = array<i32>} : memref<4x8x128xf32, #tpu.memory_space<vmem>>, vector<4x8x128xf32>,
    %c0_20 = arith.constant 0 : index
    %c0_21 = arith.constant 0 : index
    %22 = vector.load %arg6[%c0_20, %c0_21] : memref<128x512xf32, #tpu.memory_space<vmem>>, vector<128x512xf32>
    %c0_22 = arith.constant 0 : index
    %c0_23 = arith.constant 0 : index
    %23 = vector.load %arg16[%c0_22, %c0_23] : memref<8x128xf32, #tpu.memory_space<vmem>>, vector<8x128xf32>
    %c0_24 = arith.constant 0 : index
    %c0_25 = arith.constant 0 : index
    %24 = vector.load %arg17[%c0_24, %c0_25] : memref<8x128xf32, #tpu.memory_space<vmem>>, vector<8x128xf32>
    %c0_i32_26 = arith.constant 0 : i32
    %25 = arith.index_cast %c0_i32_26 : i32 to index
    %c0_27 = arith.constant 0 : index
    %c0_28 = arith.constant 0 : index
    %26 = vector.load %arg14[%25, %c0_27, %c0_28] : memref<4x8x128xf32, #tpu.memory_space<vmem>>, vector<1x8x128xf32>
    %27 = vector.shape_cast %26 : vector<1x8x128xf32> to vector<8x128xf32>
    %28 = arith.mulf %23, %27 : vector<8x128xf32>
    %29 = arith.mulf %24, %27 : vector<8x128xf32>
    %30 = arith.index_cast %c0_i32_26 : i32 to index
    %c0_29 = arith.constant 0 : index
    %c0_30 = arith.constant 0 : index
    %31 = vector.load %arg13[%30, %c0_29, %c0_30] : memref<4x8x512xf32, #tpu.memory_space<vmem>>, vector<1x8x512xf32>
    %32 = vector.shape_cast %31 : vector<1x8x512xf32> to vector<8x512xf32>
    %cst_31 = arith.constant dense<0.000000e+00> : vector<8x512xf32>
    %33 = tpu.matmul %28, %22, %cst_31 {dimension_numbers = #tpu.dot_dimension_numbers<[1], [0], [0], [1], [0, 0, 1, 1], [], []>} : vector<8x128xf32>, vector<128x512xf32>, vector<8x512xf32> -> vector<8x512xf32>
    %34 = arith.addf %32, %33 : vector<8x512xf32>
    %35 = vector.extract_strided_slice %34 {offsets = [0, 0], sizes = [8, 128], strides = [1, 1]} : vector<8x512xf32> to vector<8x128xf32>
    %36 = arith.negf %35 : vector<8x128xf32>
    %37 = math.exp %36 : vector<8x128xf32>
    %cst_32 = arith.constant 1.000000e+00 : f32
    %38 = vector.broadcast %cst_32 : f32 to vector<8x128xf32>
    %39 = arith.addf %38, %37 : vector<8x128xf32>
    %40 = arith.divf %38, %39 : vector<8x128xf32>
    %41 = vector.extract_strided_slice %34 {offsets = [0, 128], sizes = [8, 128], strides = [1, 1]} : vector<8x512xf32> to vector<8x128xf32>
    %42 = arith.negf %41 : vector<8x128xf32>
    %43 = math.exp %42 : vector<8x128xf32>
    %cst_33 = arith.constant 1.000000e+00 : f32
    %44 = vector.broadcast %cst_33 : f32 to vector<8x128xf32>
    %45 = arith.addf %44, %43 : vector<8x128xf32>
    %46 = arith.divf %44, %45 : vector<8x128xf32>
    %47 = vector.extract_strided_slice %34 {offsets = [0, 256], sizes = [8, 128], strides = [1, 1]} : vector<8x512xf32> to vector<8x128xf32>
    %48 = math.tanh %47 : vector<8x128xf32>
    %49 = vector.extract_strided_slice %34 {offsets = [0, 384], sizes = [8, 128], strides = [1, 1]} : vector<8x512xf32> to vector<8x128xf32>
    %50 = arith.negf %49 : vector<8x128xf32>
    %51 = math.exp %50 : vector<8x128xf32>
    %cst_34 = arith.constant 1.000000e+00 : f32
    %52 = vector.broadcast %cst_34 : f32 to vector<8x128xf32>
    %53 = arith.addf %52, %51 : vector<8x128xf32>
    %54 = arith.divf %52, %53 : vector<8x128xf32>
    %55 = arith.mulf %46, %29 : vector<8x128xf32>
    %56 = arith.mulf %40, %48 : vector<8x128xf32>
    %57 = arith.addf %55, %56 : vector<8x128xf32>
    %58 = math.tanh %57 : vector<8x128xf32>
    %59 = arith.mulf %54, %58 : vector<8x128xf32>
    %60 = arith.truncf %59 : vector<8x128xf32> to vector<8x128xbf16>
    %61 = arith.index_cast %c0_i32_26 : i32 to index
    %c0_35 = arith.constant 0 : index
    %c0_36 = arith.constant 0 : index
    %62 = vector.load %arg15[%61, %c0_35, %c0_36] : memref<4x8x128xbf16, #tpu.memory_space<vmem>>, vector<1x8x128xbf16>
    %63 = vector.shape_cast %62 : vector<1x8x128xbf16> to vector<8x128xbf16>
    %64 = vector.shape_cast %60 : vector<8x128xbf16> to vector<1x8x128xbf16>
    tpu.vector_store %arg15[%61, %c0_35, %c0_36], %64 {strides = array<i32>} : memref<4x8x128xbf16, #tpu.memory_space<vmem>>, vector<1x8x128xbf16>,
    %c1_i32 = arith.constant 1 : i32
    %65 = arith.index_cast %c1_i32 : i32 to index
    %c0_37 = arith.constant 0 : index
    %c0_38 = arith.constant 0 : index
    %66 = vector.load %arg14[%65, %c0_37, %c0_38] : memref<4x8x128xf32, #tpu.memory_space<vmem>>, vector<1x8x128xf32>
    %67 = vector.shape_cast %66 : vector<1x8x128xf32> to vector<8x128xf32>
    %68 = arith.mulf %59, %67 : vector<8x128xf32>
    %69 = arith.mulf %57, %67 : vector<8x128xf32>
    %70 = arith.index_cast %c1_i32 : i32 to index
    %c0_39 = arith.constant 0 : index
    %c0_40 = arith.constant 0 : index
    %71 = vector.load %arg13[%70, %c0_39, %c0_40] : memref<4x8x512xf32, #tpu.memory_space<vmem>>, vector<1x8x512xf32>
    %72 = vector.shape_cast %71 : vector<1x8x512xf32> to vector<8x512xf32>
    %cst_41 = arith.constant dense<0.000000e+00> : vector<8x512xf32>
    %73 = tpu.matmul %68, %22, %cst_41 {dimension_numbers = #tpu.dot_dimension_numbers<[1], [0], [0], [1], [0, 0, 1, 1], [], []>} : vector<8x128xf32>, vector<128x512xf32>, vector<8x512xf32> -> vector<8x512xf32>
    %74 = arith.addf %72, %73 : vector<8x512xf32>
    %75 = vector.extract_strided_slice %74 {offsets = [0, 0], sizes = [8, 128], strides = [1, 1]} : vector<8x512xf32> to vector<8x128xf32>
    %76 = arith.negf %75 : vector<8x128xf32>
    %77 = math.exp %76 : vector<8x128xf32>
    %cst_42 = arith.constant 1.000000e+00 : f32
    %78 = vector.broadcast %cst_42 : f32 to vector<8x128xf32>
    %79 = arith.addf %78, %77 : vector<8x128xf32>
    %80 = arith.divf %78, %79 : vector<8x128xf32>
    %81 = vector.extract_strided_slice %74 {offsets = [0, 128], sizes = [8, 128], strides = [1, 1]} : vector<8x512xf32> to vector<8x128xf32>
    %82 = arith.negf %81 : vector<8x128xf32>
    %83 = math.exp %82 : vector<8x128xf32>
    %cst_43 = arith.constant 1.000000e+00 : f32
    %84 = vector.broadcast %cst_43 : f32 to vector<8x128xf32>
    %85 = arith.addf %84, %83 : vector<8x128xf32>
    %86 = arith.divf %84, %85 : vector<8x128xf32>
    %87 = vector.extract_strided_slice %74 {offsets = [0, 256], sizes = [8, 128], strides = [1, 1]} : vector<8x512xf32> to vector<8x128xf32>
    %88 = math.tanh %87 : vector<8x128xf32>
    %89 = vector.extract_strided_slice %74 {offsets = [0, 384], sizes = [8, 128], strides = [1, 1]} : vector<8x512xf32> to vector<8x128xf32>
    %90 = arith.negf %89 : vector<8x128xf32>
    %91 = math.exp %90 : vector<8x128xf32>
    %cst_44 = arith.constant 1.000000e+00 : f32
    %92 = vector.broadcast %cst_44 : f32 to vector<8x128xf32>
    %93 = arith.addf %92, %91 : vector<8x128xf32>
    %94 = arith.divf %92, %93 : vector<8x128xf32>
    %95 = arith.mulf %86, %69 : vector<8x128xf32>
    %96 = arith.mulf %80, %88 : vector<8x128xf32>
    %97 = arith.addf %95, %96 : vector<8x128xf32>
    %98 = math.tanh %97 : vector<8x128xf32>
    %99 = arith.mulf %94, %98 : vector<8x128xf32>
    %100 = arith.truncf %99 : vector<8x128xf32> to vector<8x128xbf16>
    %101 = arith.index_cast %c1_i32 : i32 to index
    %c0_45 = arith.constant 0 : index
    %c0_46 = arith.constant 0 : index
    %102 = vector.load %arg15[%101, %c0_45, %c0_46] : memref<4x8x128xbf16, #tpu.memory_space<vmem>>, vector<1x8x128xbf16>
    %103 = vector.shape_cast %102 : vector<1x8x128xbf16> to vector<8x128xbf16>
    %104 = vector.shape_cast %100 : vector<8x128xbf16> to vector<1x8x128xbf16>
    tpu.vector_store %arg15[%101, %c0_45, %c0_46], %104 {strides = array<i32>} : memref<4x8x128xbf16, #tpu.memory_space<vmem>>, vector<1x8x128xbf16>,
    %c2_i32 = arith.constant 2 : i32
    %105 = arith.index_cast %c2_i32 : i32 to index
    %c0_47 = arith.constant 0 : index
    %c0_48 = arith.constant 0 : index
    %106 = vector.load %arg14[%105, %c0_47, %c0_48] : memref<4x8x128xf32, #tpu.memory_space<vmem>>, vector<1x8x128xf32>
    %107 = vector.shape_cast %106 : vector<1x8x128xf32> to vector<8x128xf32>
    %108 = arith.mulf %99, %107 : vector<8x128xf32>
    %109 = arith.mulf %97, %107 : vector<8x128xf32>
    %110 = arith.index_cast %c2_i32 : i32 to index
    %c0_49 = arith.constant 0 : index
    %c0_50 = arith.constant 0 : index
    %111 = vector.load %arg13[%110, %c0_49, %c0_50] : memref<4x8x512xf32, #tpu.memory_space<vmem>>, vector<1x8x512xf32>
    %112 = vector.shape_cast %111 : vector<1x8x512xf32> to vector<8x512xf32>
    %cst_51 = arith.constant dense<0.000000e+00> : vector<8x512xf32>
    %113 = tpu.matmul %108, %22, %cst_51 {dimension_numbers = #tpu.dot_dimension_numbers<[1], [0], [0], [1], [0, 0, 1, 1], [], []>} : vector<8x128xf32>, vector<128x512xf32>, vector<8x512xf32> -> vector<8x512xf32>
    %114 = arith.addf %112, %113 : vector<8x512xf32>
    %115 = vector.extract_strided_slice %114 {offsets = [0, 0], sizes = [8, 128], strides = [1, 1]} : vector<8x512xf32> to vector<8x128xf32>
    %116 = arith.negf %115 : vector<8x128xf32>
    %117 = math.exp %116 : vector<8x128xf32>
    %cst_52 = arith.constant 1.000000e+00 : f32
    %118 = vector.broadcast %cst_52 : f32 to vector<8x128xf32>
    %119 = arith.addf %118, %117 : vector<8x128xf32>
    %120 = arith.divf %118, %119 : vector<8x128xf32>
    %121 = vector.extract_strided_slice %114 {offsets = [0, 128], sizes = [8, 128], strides = [1, 1]} : vector<8x512xf32> to vector<8x128xf32>
    %122 = arith.negf %121 : vector<8x128xf32>
    %123 = math.exp %122 : vector<8x128xf32>
    %cst_53 = arith.constant 1.000000e+00 : f32
    %124 = vector.broadcast %cst_53 : f32 to vector<8x128xf32>
    %125 = arith.addf %124, %123 : vector<8x128xf32>
    %126 = arith.divf %124, %125 : vector<8x128xf32>
    %127 = vector.extract_strided_slice %114 {offsets = [0, 256], sizes = [8, 128], strides = [1, 1]} : vector<8x512xf32> to vector<8x128xf32>
    %128 = math.tanh %127 : vector<8x128xf32>
    %129 = vector.extract_strided_slice %114 {offsets = [0, 384], sizes = [8, 128], strides = [1, 1]} : vector<8x512xf32> to vector<8x128xf32>
    %130 = arith.negf %129 : vector<8x128xf32>
    %131 = math.exp %130 : vector<8x128xf32>
    %cst_54 = arith.constant 1.000000e+00 : f32
    %132 = vector.broadcast %cst_54 : f32 to vector<8x128xf32>
    %133 = arith.addf %132, %131 : vector<8x128xf32>
    %134 = arith.divf %132, %133 : vector<8x128xf32>
    %135 = arith.mulf %126, %109 : vector<8x128xf32>
    %136 = arith.mulf %120, %128 : vector<8x128xf32>
    %137 = arith.addf %135, %136 : vector<8x128xf32>
    %138 = math.tanh %137 : vector<8x128xf32>
    %139 = arith.mulf %134, %138 : vector<8x128xf32>
    %140 = arith.truncf %139 : vector<8x128xf32> to vector<8x128xbf16>
    %141 = arith.index_cast %c2_i32 : i32 to index
    %c0_55 = arith.constant 0 : index
    %c0_56 = arith.constant 0 : index
    %142 = vector.load %arg15[%141, %c0_55, %c0_56] : memref<4x8x128xbf16, #tpu.memory_space<vmem>>, vector<1x8x128xbf16>
    %143 = vector.shape_cast %142 : vector<1x8x128xbf16> to vector<8x128xbf16>
    %144 = vector.shape_cast %140 : vector<8x128xbf16> to vector<1x8x128xbf16>
    tpu.vector_store %arg15[%141, %c0_55, %c0_56], %144 {strides = array<i32>} : memref<4x8x128xbf16, #tpu.memory_space<vmem>>, vector<1x8x128xbf16>,
    %c3_i32 = arith.constant 3 : i32
    %145 = arith.index_cast %c3_i32 : i32 to index
    %c0_57 = arith.constant 0 : index
    %c0_58 = arith.constant 0 : index
    %146 = vector.load %arg14[%145, %c0_57, %c0_58] : memref<4x8x128xf32, #tpu.memory_space<vmem>>, vector<1x8x128xf32>
    %147 = vector.shape_cast %146 : vector<1x8x128xf32> to vector<8x128xf32>
    %148 = arith.mulf %139, %147 : vector<8x128xf32>
    %149 = arith.mulf %137, %147 : vector<8x128xf32>
    %150 = arith.index_cast %c3_i32 : i32 to index
    %c0_59 = arith.constant 0 : index
    %c0_60 = arith.constant 0 : index
    %151 = vector.load %arg13[%150, %c0_59, %c0_60] : memref<4x8x512xf32, #tpu.memory_space<vmem>>, vector<1x8x512xf32>
    %152 = vector.shape_cast %151 : vector<1x8x512xf32> to vector<8x512xf32>
    %cst_61 = arith.constant dense<0.000000e+00> : vector<8x512xf32>
    %153 = tpu.matmul %148, %22, %cst_61 {dimension_numbers = #tpu.dot_dimension_numbers<[1], [0], [0], [1], [0, 0, 1, 1], [], []>} : vector<8x128xf32>, vector<128x512xf32>, vector<8x512xf32> -> vector<8x512xf32>
    %154 = arith.addf %152, %153 : vector<8x512xf32>
    %155 = vector.extract_strided_slice %154 {offsets = [0, 0], sizes = [8, 128], strides = [1, 1]} : vector<8x512xf32> to vector<8x128xf32>
    %156 = arith.negf %155 : vector<8x128xf32>
    %157 = math.exp %156 : vector<8x128xf32>
    %cst_62 = arith.constant 1.000000e+00 : f32
    %158 = vector.broadcast %cst_62 : f32 to vector<8x128xf32>
    %159 = arith.addf %158, %157 : vector<8x128xf32>
    %160 = arith.divf %158, %159 : vector<8x128xf32>
    %161 = vector.extract_strided_slice %154 {offsets = [0, 128], sizes = [8, 128], strides = [1, 1]} : vector<8x512xf32> to vector<8x128xf32>
    %162 = arith.negf %161 : vector<8x128xf32>
    %163 = math.exp %162 : vector<8x128xf32>
    %cst_63 = arith.constant 1.000000e+00 : f32
    %164 = vector.broadcast %cst_63 : f32 to vector<8x128xf32>
    %165 = arith.addf %164, %163 : vector<8x128xf32>
    %166 = arith.divf %164, %165 : vector<8x128xf32>
    %167 = vector.extract_strided_slice %154 {offsets = [0, 256], sizes = [8, 128], strides = [1, 1]} : vector<8x512xf32> to vector<8x128xf32>
    %168 = math.tanh %167 : vector<8x128xf32>
    %169 = vector.extract_strided_slice %154 {offsets = [0, 384], sizes = [8, 128], strides = [1, 1]} : vector<8x512xf32> to vector<8x128xf32>
    %170 = arith.negf %169 : vector<8x128xf32>
    %171 = math.exp %170 : vector<8x128xf32>
    %cst_64 = arith.constant 1.000000e+00 : f32
    %172 = vector.broadcast %cst_64 : f32 to vector<8x128xf32>
    %173 = arith.addf %172, %171 : vector<8x128xf32>
    %174 = arith.divf %172, %173 : vector<8x128xf32>
    %175 = arith.mulf %166, %149 : vector<8x128xf32>
    %176 = arith.mulf %160, %168 : vector<8x128xf32>
    %177 = arith.addf %175, %176 : vector<8x128xf32>
    %178 = math.tanh %177 : vector<8x128xf32>
    %179 = arith.mulf %174, %178 : vector<8x128xf32>
    %180 = arith.truncf %179 : vector<8x128xf32> to vector<8x128xbf16>
    %181 = arith.index_cast %c3_i32 : i32 to index
    %c0_65 = arith.constant 0 : index
    %c0_66 = arith.constant 0 : index
    %182 = vector.load %arg15[%181, %c0_65, %c0_66] : memref<4x8x128xbf16, #tpu.memory_space<vmem>>, vector<1x8x128xbf16>
    %183 = vector.shape_cast %182 : vector<1x8x128xbf16> to vector<8x128xbf16>
    %184 = vector.shape_cast %180 : vector<8x128xbf16> to vector<1x8x128xbf16>
    tpu.vector_store %arg15[%181, %c0_65, %c0_66], %184 {strides = array<i32>} : memref<4x8x128xbf16, #tpu.memory_space<vmem>>, vector<1x8x128xbf16>,
    %c4_i32 = arith.constant 4 : i32
    %c0_67 = arith.constant 0 : index
    %c0_68 = arith.constant 0 : index
    %185 = vector.load %arg16[%c0_67, %c0_68] : memref<8x128xf32, #tpu.memory_space<vmem>>, vector<8x128xf32>
    tpu.vector_store %arg16[%c0_67, %c0_68], %179 {strides = array<i32>} : memref<8x128xf32, #tpu.memory_space<vmem>>, vector<8x128xf32>,
    %c0_69 = arith.constant 0 : index
    %c0_70 = arith.constant 0 : index
    %186 = vector.load %arg17[%c0_69, %c0_70] : memref<8x128xf32, #tpu.memory_space<vmem>>, vector<8x128xf32>
    tpu.vector_store %arg17[%c0_69, %c0_70], %177 {strides = array<i32>} : memref<8x128xf32, #tpu.memory_space<vmem>>, vector<8x128xf32>,
    %c0_71 = arith.constant 0 : index
    %c0_72 = arith.constant 0 : index
    %187 = vector.load %arg11[%c0_71, %c0_72] : memref<8x128xf32, #tpu.memory_space<vmem>>, vector<8x128xf32>
    tpu.vector_store %arg11[%c0_71, %c0_72], %179 {strides = array<i32>} : memref<8x128xf32, #tpu.memory_space<vmem>>, vector<8x128xf32>,
    %c0_73 = arith.constant 0 : index
    %c0_74 = arith.constant 0 : index
    %188 = vector.load %arg12[%c0_73, %c0_74] : memref<8x128xf32, #tpu.memory_space<vmem>>, vector<8x128xf32>
    tpu.vector_store %arg12[%c0_73, %c0_74], %177 {strides = array<i32>} : memref<8x128xf32, #tpu.memory_space<vmem>>, vector<8x128xf32>,
    %c0_75 = arith.constant 0 : index
    %c0_76 = arith.constant 0 : index
    %c0_77 = arith.constant 0 : index
    %189 = vector.load %arg15[%c0_75, %c0_76, %c0_77] : memref<4x8x128xbf16, #tpu.memory_space<vmem>>, vector<4x8x128xbf16>
    %190 = vector.shape_cast %189 : vector<4x8x128xbf16> to vector<32x128xbf16>
    %c0_78 = arith.constant 0 : index
    %c0_79 = arith.constant 0 : index
    %191 = vector.load %arg8[%c0_78, %c0_79] : memref<128x128xbf16, #tpu.memory_space<vmem>>, vector<128x128xbf16>
    %cst_80 = arith.constant dense<0.000000e+00> : vector<32x128xf32>
    %192 = tpu.matmul %190, %191, %cst_80 {dimension_numbers = #tpu.dot_dimension_numbers<[1], [0], [0], [1], [0, 0, 1, 1], [], []>} : vector<32x128xbf16>, vector<128x128xbf16>, vector<32x128xf32> -> vector<32x128xf32>
    %c0_81 = arith.constant 0 : index
    %c0_82 = arith.constant 0 : index
    %193 = vector.load %arg9[%c0_81, %c0_82] : memref<1x128xf32, #tpu.memory_space<vmem>>, vector<1x128xf32>
    %194 = vector.broadcast %193 : vector<1x128xf32> to vector<32x128xf32>
    %195 = arith.addf %192, %194 : vector<32x128xf32>
    %c0_83 = arith.constant 0 : index
    %c0_84 = arith.constant 0 : index
    %196 = vector.load %arg10[%c0_83, %c0_84] : memref<32x128xf32, #tpu.memory_space<vmem>>, vector<32x128xf32>
    tpu.vector_store %arg10[%c0_83, %c0_84], %195 {strides = array<i32>} : memref<32x128xf32, #tpu.memory_space<vmem>>, vector<32x128xf32>,
    return
  }
  func.func @transform_0(%arg0: i32) -> (i32, i32) {
    %c0_i32 = arith.constant 0 : i32
    %c0_i32_0 = arith.constant 0 : i32
    return %arg0, %c0_i32 : i32, i32
  }
  func.func @transform_1(%arg0: i32) -> (i32, i32, i32) {
    %c0_i32 = arith.constant 0 : i32
    %c0_i32_0 = arith.constant 0 : i32
    %c0_i32_1 = arith.constant 0 : i32
    return %arg0, %c0_i32, %c0_i32_0 : i32, i32, i32
  }
  func.func @transform_2(%arg0: i32) -> (i32, i32) {
    %c0_i32 = arith.constant 0 : i32
    %c0_i32_0 = arith.constant 0 : i32
    %c0_i32_1 = arith.constant 0 : i32
    return %c0_i32, %c0_i32_0 : i32, i32
  }
  func.func @transform_3(%arg0: i32) -> (i32, i32) {
    %c0_i32 = arith.constant 0 : i32
    %c0_i32_0 = arith.constant 0 : i32
    %c0_i32_1 = arith.constant 0 : i32
    return %c0_i32, %c0_i32_0 : i32, i32
  }
  func.func @transform_4(%arg0: i32) -> (i32, i32) {
    %c0_i32 = arith.constant 0 : i32
    %c0_i32_0 = arith.constant 0 : i32
    %c0_i32_1 = arith.constant 0 : i32
    return %c0_i32, %c0_i32_0 : i32, i32
  }
  func.func @transform_5(%arg0: i32) -> (i32, i32) {
    %c0_i32 = arith.constant 0 : i32
    %c0_i32_0 = arith.constant 0 : i32
    %c0_i32_1 = arith.constant 0 : i32
    return %c0_i32, %c0_i32_0 : i32, i32
  }
  func.func @transform_6(%arg0: i32) -> (i32, i32) {
    %c0_i32 = arith.constant 0 : i32
    %c0_i32_0 = arith.constant 0 : i32
    %c0_i32_1 = arith.constant 0 : i32
    return %c0_i32, %c0_i32_0 : i32, i32
  }
  func.func @transform_7(%arg0: i32) -> (i32, i32) {
    %c0_i32 = arith.constant 0 : i32
    %c0_i32_0 = arith.constant 0 : i32
    %c0_i32_1 = arith.constant 0 : i32
    return %c0_i32, %c0_i32_0 : i32, i32
  }
  func.func @transform_8(%arg0: i32) -> (i32, i32) {
    %c0_i32 = arith.constant 0 : i32
    %c0_i32_0 = arith.constant 0 : i32
    %c0_i32_1 = arith.constant 0 : i32
    return %c0_i32, %c0_i32_0 : i32, i32
  }
  func.func @transform_9(%arg0: i32) -> (i32, i32) {
    %c0_i32 = arith.constant 0 : i32
    %c0_i32_0 = arith.constant 0 : i32
    return %arg0, %c0_i32 : i32, i32
  }
  func.func @transform_10(%arg0: i32) -> (i32, i32) {
    %c0_i32 = arith.constant 0 : i32
    %c0_i32_0 = arith.constant 0 : i32
    %c0_i32_1 = arith.constant 0 : i32
    return %c0_i32, %c0_i32_0 : i32, i32
  }
  func.func @transform_11(%arg0: i32) -> (i32, i32) {
    %c0_i32 = arith.constant 0 : i32
    %c0_i32_0 = arith.constant 0 : i32
    %c0_i32_1 = arith.constant 0 : i32
    return %c0_i32, %c0_i32_0 : i32, i32
  }
}

</mosaic_0001>

<bundles_post_ra>
// kernel: tpu_custom_call.1
= control target key start
LH: loop header
LB: loop body
LE: loop exit
PB: predicated region body
PF: predicated region fallthrough
CT: control target
= control target key end

     0   :  { %s3528_s0 = inlined_call_operand.hbm [shape: bf16[64,128], index: 0, kind: input, shape index: {}]   ;;  %s3529_s1 = inlined_call_operand.vmem [shape: f32[8,8,1], index: 1, kind: input, shape index: {}]   ;;  %s3530_s2 = inlined_call_operand.vmem [shape: bf16[128,128], index: 2, kind: input, shape index: {}]   ;;  %s3531_s3 = inlined_call_operand.vmem [shape: f32[1,128], index: 3, kind: input, shape index: {}]   ;;  %s3532_s4 = inlined_call_operand.hbm [shape: bf16[128,512], index: 4, kind: input, shape index: {}]   ;;  %s3533_s5 = inlined_call_operand.hbm [shape: f32[128,512], index: 5, kind: input, shape index: {}]   ;;  %s3534_s6 = inlined_call_operand.vmem [shape: f32[1,512], index: 6, kind: input, shape index: {}]   ;;  %s3535_s7 = inlined_call_operand.hbm [shape: bf16[128,128], index: 7, kind: input, shape index: {}]   ;;  %s3536_s8 = inlined_call_operand.vmem [shape: f32[1,128], index: 8, kind: input, shape index: {}]   ;;  %s3537_s9 = inlined_call_operand.hbm [shape: f32[64,128], index: 9, kind: output, shape index: {0}]   ;;  %s3538_s10 = inlined_call_operand.hbm [shape: f32[8,128], index: 10, kind: output, shape index: {1}]   ;;  %s3539_s11 = inlined_call_operand.hbm [shape: f32[8,128], index: 11, kind: output, shape index: {2}]  }
   0x1   :  { %3603 = sst [smem:[#allocation65_spill]] %s3532_s4 }
   0x2   :  { %3604 = sst [smem:[#allocation66_spill]] %s3533_s5 }
   0x3   :  { %3605 = sst [smem:[#allocation67_spill]] %s3535_s7 }
   0x4   :  { %17 = vsyncpa [#allocation8], 0 }
   0x5   :  { %19 = vsyncpa [#allocation8 + $0x1], 0 }
   0x6   :  { %20 = vsyncpa [#allocation11], 0 }
   0x7   :  { %21 = vsyncpa [#allocation14], 0 }
   0x8   :  { %22 = vsyncpa [#allocation9], 0 }
   0x9   :  { %24 = vsyncpa [#allocation9 + $0x1], 0 }
   0xa   :  { %25 = vsyncpa [#allocation17], 0  ;;  %s2797_s17 = smov 0   ;;  %s2799_s18 = smov 0  }
   0xb   :  { %s2801_s19 = smov 0   ;;  %s2803_s20 = smov 0  }
   0xc LB: > { %s2818_s21 = sadd.s32 4294967295, %s2717_s20   ;;  %s2088_s22 = sadd.s32 4294967294, %s2717_s20   ;;  %s2717_s20 = sphi %s2803_s20, %s3743_s20   ;;  %s2713_s19 = sphi %s2801_s19, %s3742_s19   ;;  %s2709_s18 = sphi %s2799_s18, %s3741_s18   ;;  %s2705_s17 = sphi %s2797_s17, %s3740_s17  }
   0xd   : > { %p51_p0 = scmp.ne.s32.totalorder %s2709_s18, %s2705_s17  ;;  %p3540_p1 = scmp.eq.s32.totalorder %s2818_s21, 0 }
   0xe   : > { %p254_p3 = scmp.eq.s32.totalorder %s2088_s22, 1  ;;  %p2089_p5 = scmp.ge.s32.totalorder %s2717_s20, 1 }
   0xf   : > { %p2827_p4 = por %p3540_p1, %p51_p0  ;;  %p303_p7 = scmp.lt.s32.totalorder %s2717_s20, 3 }
  0x10   : > { %p2832_p6 = por %p254_p3, %p51_p0  ;;  %s2719_s26 = smov [#allocation10]  }
  0x11   : > { %s3606_s23 = scalar_select %p2827_p4, 1, 0 }
  0x12   : > { %s3607_s24 = scalar_select %p2832_p6, 1, 0 }
  0x13   : > { %p2838_p9 = pnand %p2089_p5, %p303_p7  ;;  %s321_s27 = sshll.u32 %s2719_s26, 4  ;;  %s322_s27 = int_to_ptr.vmem [resolvable:$true] %s321_s27 }
  0x14   : > { %3608 = sst [smem:[#allocation24_spill]] %s3607_s24  ;;  %s2720_s29 = smov [#allocation12]  }
  0x15   : > { %s3609_s25 = scalar_select %p2838_p9, 1, 0 }
  0x16   : > { %p2267_p10 = pneg %p2838_p9  ;;  %s334_s30 = sshll.u32 %s2720_s29, 4  ;;  %s335_s30 = int_to_ptr.vmem [resolvable:$true] %s334_s30 }
  0x17   : > { %s2498_s12 = scalar_lea.vmem %s322_s27, 4096  ;;  %p2506_p7 = scmp.lt.s32.totalorder %s322_s27, %s322_s27 }
  0x18   : > { %p2847_p12 = pnand %p2267_p10, %p3540_p1  ;;  %p2499_p0 = scmp.ne.s32.totalorder %s322_s27, %s2498_s12 }
  0x19   : > { %p2507_p11 = scmp.lt.s32.totalorder %s2498_s12, %s2498_s12 }
  0x1a   : > { %p2489_p13 = pneg %p2847_p12 }
  0x1b   : > { %p2508_p8 = por %p2507_p11, %p2506_p7 }
  0x1c   : > { %p2501_p3 = pnand %p2499_p0, %p2489_p13 }
  0x1e   : > { %p2502_p5 = pneg %p2501_p3 }
  0x20   : > { %p2509_p10 = pnand %p2508_p8, %p2502_p5 }
  0x22   : > { %2512 = shalt.err (!%p2509_p10)
}
  0x23   : > { %s2721_s13 = smov 256   ;;  %s2722_s14 = smov 16  }
  0x24   : > { %s3611_s4 = sld [smem:[#allocation65_spill]]  ;;  %s2524_s22 = scalar_lea.vmem %s335_s30, 8192 }
  0x25   : > { %p2525_p1 = scmp.ne.s32.totalorder %s335_s30, %s2524_s22  ;;  %p2532_p2 = scmp.lt.s32.totalorder %s335_s30, %s335_s30 }
  0x26   : > { %p2533_p6 = scmp.lt.s32.totalorder %s2524_s22, %s2524_s22 }
  0x27   : > { %p2527_p0 = pnand %p2525_p1, %p2489_p13 }
  0x28   : > { %p2534_p11 = por %p2533_p6, %p2532_p2 }
  0x29   : > { %p2528_p3 = pneg %p2527_p0 }
  0x2a   : > { %2270 = dma.hbm_to_vmem [thread:$0]  (!%p2847_p12), %s3611_s4, 4096, %s322_s27, [#allocation11], %s2721_s13, %s2721_s13, %s2722_s14  }
  0x2b   : > { %p2535_p8 = pnand %p2534_p11, %p2528_p3 }
  0x2d   : > { %2538 = shalt.err (!%p2535_p8)
}
  0x2e   : > { %s2723_s26 = smov 512   ;;  %s2724_s29 = smov 32  }
  0x2f   : > { %s3612_s5 = sld [smem:[#allocation66_spill]]  ;;  %s2725_s27 = smov [#allocation13]  }
  0x30   : > { %s350_s13 = sshll.u32 %s2725_s27, 4  ;;  %s351_s13 = int_to_ptr.vmem [resolvable:$true] %s350_s13 }
  0x31   : > { %s2550_s14 = scalar_lea.vmem %s351_s13, 1024  ;;  %p2558_p6 = scmp.lt.s32.totalorder %s351_s13, %s351_s13 }
  0x32   : > { %p2551_p1 = scmp.ne.s32.totalorder %s351_s13, %s2550_s14  ;;  %p2559_p7 = scmp.lt.s32.totalorder %s2550_s14, %s2550_s14 }
  0x34   : > { %p2553_p5 = pnand %p2551_p1, %p2489_p13  ;;  %p2560_p10 = por %p2559_p7, %p2558_p6 }
  0x35   : > { %2273 = dma.hbm_to_vmem [thread:$0]  (!%p2847_p12), %s3612_s5, 8192, %s335_s30, [#allocation11], %s2723_s26, %s2723_s26, %s2724_s29  }
  0x36   : > { %p2554_p2 = pneg %p2553_p5 }
  0x38   : > { %p2561_p0 = pnand %p2560_p10, %p2554_p2 }
  0x3a   : > { %2564 = shalt.err (!%p2561_p0)
}
  0x3b   : > { %s3542_s15 = smov 64   ;;  %s3543_s24 = smov 4  }
  0x3c   : > { %s3613_s7 = sld [smem:[#allocation67_spill]]  ;;  %s2881_s22 = sadd.s32 1, %s2717_s20  }
  0x3d   : > { %s35_s26 = ssub.s32 %s2717_s20, %s2881_s22  ;;  %s38_s29 = sadd.s32 1, %s2713_s19 }
  0x3e   : > { %p36_p13 = scmp.eq.s32.totalorder %s35_s26, 0  ;;  %p45_p3 = scmp.ne.s32.totalorder %s2713_s19, %s2709_s18 }
  0x3f   : > { %p46_p11 = scmp.eq.s32.totalorder %s2717_s20, 0  ;;  %p2288_p8 = scmp.lt.s32.totalorder %s2717_s20, 2 }
  0x40   : > { %s2891_s12 = scalar_select %p36_p13, %s2713_s19, %s38_s29  }
  0x41   : > { %p47_p1 = por %p46_p11, %p45_p3  ;;  %p3615_p5 = scmp.eq.s32.totalorder %s2818_s21, 1 }
  0x42   : > { %2276 = dma.hbm_to_vmem [thread:$0]  (!%p2847_p12), %s3613_s7, 1024, %s351_s13, [#allocation14], %s3542_s15, %s3542_s15, %s3543_s24  }
  0x43   : > { %3614 = sst [smem:[#allocation25_spill]] %s2891_s12  ;;  %p2895_p2 = por %p3615_p5, %p45_p3 }
  0x44   : > { %s367_s27 = sand.u32 1, %s2713_s19   ;;  %s2181_s14 = sshll.u32 %s2717_s20, 8 }
  0x45   : > { %s3616_s28 = scalar_select %p2895_p2, 1, 0 }
  0x46   : > { %s2094_s13 = sshll.u32 %s367_s27, 4  ;;  %s2904_s15 = scalar_lea.hbm %s3528_s0, %s2181_s14 }
  0x47   : > { %s371_s26 = scalar_lea.vmem [#allocation7], %s2094_s13  ;;  %p2906_p12 = pnand %p2288_p8, %p47_p1 }
  0x48   : > { %s378_s29 = sshll.u32 %s371_s26, 4  ;;  %s2912_s4 = scalar_lea.sflag [#allocation8], %s367_s27  ;;  %s2910_s29 = int_to_ptr.vmem [resolvable:$true] %s378_s29 }
  0x49   : > { %s2565_s5 = scalar_lea.hbm %s2904_s15, 256  ;;  %p2567_p7 = pneg %p2906_p12 }
  0x4a   : > { %p2566_p6 = scmp.ne.s32.totalorder %s2904_s15, %s2565_s5  ;;  %s2570_s13 = scalar_lea.hbm %s3528_s0, 512 }
  0x4b   : > { %p2571_p13 = scmp.lt.s32.totalorder %s2904_s15, %s3528_s0  ;;  %p2572_p3 = scmp.lt.s32.totalorder %s2570_s13, %s2565_s5 }
  0x4c   : > { %p2568_p10 = pnand %p2567_p7, %p2566_p6 }
  0x4d   : > { %p2573_p11 = por %p2572_p3, %p2571_p13 }
  0x4e   : > { %p2569_p0 = pneg %p2568_p10 }
  0x50   : > { %p2574_p8 = pnand %p2573_p11, %p2569_p0 }
  0x52   : > { %2577 = shalt.err (!%p2574_p8)
}
  0x53   : > { %s2578_s27 = scalar_lea.vmem %s2910_s29, 256  ;;  %s2728_s7 = smov [#allocation7]  }
  0x54   : > { %p2579_p1 = scmp.ne.s32.totalorder %s2910_s29, %s2578_s27  ;;  %s2583_s12 = sshll.u32 %s2728_s7, 4  ;;  %s2584_s12 = int_to_ptr.vmem [resolvable:$false] %s2583_s12 }
  0x55   : > { %s2585_s14 = scalar_lea.vmem %s2584_s12, 512  ;;  %p2586_p10 = scmp.lt.s32.totalorder %s2910_s29, %s2584_s12 }
  0x56   : > { %p2581_p5 = pnand %p2579_p1, %p2567_p7  ;;  %p2587_p2 = scmp.lt.s32.totalorder %s2585_s14, %s2578_s27 }
  0x58   : > { %p2582_p6 = pneg %p2581_p5  ;;  %p2588_p4 = por %p2587_p2, %p2586_p10 }
  0x5a   : > { %p2589_p9 = pnand %p2588_p4, %p2582_p6 }
  0x5c   : > { %2592 = shalt.err (!%p2589_p9)
}
  0x5d   : > { %s3618_s5 = smov 4   ;;  %s3619_s30 = smov 64  }
  0x5e   : > { %2280 = dma.hbm_to_vmem [thread:$0]  (!%p2906_p12), %s2904_s15, 256, %s2910_s29, %s2912_s4, %s3619_s30, %s3619_s30, %s3618_s5  }
  0x5f   : > { %p3620_p7 = scmp.ne.s32.totalorder %s3609_s25, 0 }
  0x61   : > { %399 = sbr.rel (%p3620_p7) target bundleno = 1642 (0x66a), region = 56 }
  0x66   : > { %s2939_s7 = sand.u32 1, %s2709_s18   ;;  %p3621_p4 = scmp.ne.s32.totalorder %s3606_s23, 0 }
  0x67   : > { %s2098_s12 = sshll.u32 %s2939_s7, 4  ;;  %s402_s13 = scalar_lea.sflag [#allocation8], %s2939_s7 }
  0x68   : > { %s2943_s16 = scalar_lea.vmem [#allocation7], %s2098_s12 }
  0x69   : > { %2684 = dma.done.wait (%p3621_p4), %s402_s13, 256  }
  0x6a   : > { %2686 = vsyncadd (%p3621_p4), %s402_s13, 4294967040  ;;  %p3622_p9 = scmp.eq.s32.totalorder %s2818_s21, 0 }
  0x6c   : > { %2688 = dma.done.wait (%p3622_p9), [#allocation11], 12288   ;;  %p3623_p2 = pmov %p3622_p9 }
  0x6e   : > { %2690 = vsyncadd (%p3623_p2), [#allocation11], 4294955008  ;;  %p3624_p12 = pmov %p3623_p2 }
  0x6f   : > { %p3625_p0 = pmov %p3623_p2 }
  0x70   : > { %2692 = dma.done.wait (%p3624_p12), [#allocation14], 1024  }
  0x71   : > { %2694 = vsyncadd (%p3625_p0), [#allocation14], 4294966272  ;;  %s2102_s4 = sshll.u32 %s2939_s7, 5  ;;  %s2103_s25 = sshll.u32 %s2818_s21, 2 }
  0x72   : > { %p463_p13 = scmp.lt.s32.totalorder %s2103_s25, 7  ;;  %s2964_s26 = scalar_lea.vmem [#allocation15], %s2102_s4 }
  0x73   : > { %p3626_p3 = scmp.ne.s32.totalorder %s2818_s21, 0 }
  0x74   : > { %s3745_s25 = smov (!%p463_p13, %s2103_s25), 7 }
  0x75   : > { %s2104_s23 = sshll.u32 %s3745_s25, 3  ;;  %473 = sbr.rel (%p3626_p3) target bundleno = 124 (0x7c), region = 76 }
  0x76   : > { %s2962_s29 = scalar_lea.vmem %s3529_s1, %s2104_s23 }
  0x7a   : > { %v2729_v0 = vmov 0.0  }
  0x7b   : > { %474 = vst [vmem:[#allocation5] sm:$0xff] %v2729_v0  ;;  %475 = vst [vmem:[#allocation6] sm:$0xff] %v2729_v0 }
  0x7c PF: > { %v2347_v1 = vld [vmem:[%s3530_s2 + $0x38] sm:$0xff]   ;;  %v2348_v2 = vld [vmem:[%s3530_s2 + $0x30] sm:$0xff]   ;;  %v2730_v3 = vmov 0   ;;  %v2349_v4 = vld [vmem:[%s3530_s2 + $0x28] sm:$0xff]   ;;  %p3729_p8 = scmp.eq.s32.totalorder %s2818_s21, 1 }
  0x7d   : > { %2345 = vset.pattern.permute.xlu0 %v2730_v3  ;;  %864 = vmatprep.mubr.bf16.mxu1 %v2730_v3  ;;  %v2350_v5 = vld [vmem:[%s3530_s2 + $0x20] sm:$0xff]   ;;  %v2351_v9 = vld [vmem:[%s3530_s2 + $0x18] sm:$0xff]   ;;  %v955_v10 = vld [vmem:[%s2962_s29 + $0x8] sm:$0xff] }
  0x7e   : > { %2203 = vmatprep.subr.bf16.mxu0 %v2347_v1  ;;  %2346 = vset.pattern.permute.xlu1 %v2730_v3  ;;  %v2355_v6 = vld [vmem:[%s2943_s16] sm:$0xff]   ;;  %v2353_v15 = vld [vmem:[%s3530_s2 + $0x8] sm:$0xff]   ;;  %v3002_v47 = vld [vmem:[#allocation12 + $0x1f8] sm:$0xff] }
  0x7f   : > { %2204 = vmatpush3.bf16.msra.mxu0 %v2347_v1  ;;  %2219 = vmatprep.mubr.bf16.mxu0 %v2355_v6  ;;  %v954_v7 = vld [vmem:[%s2962_s29] sm:$0xff]  ;;  %v2352_v13 = vld [vmem:[%s3530_s2 + $0x10] sm:$0xff]   ;;  %v2361_v17 = vld [vmem:[#allocation10 + $0xec] ss:$16 sps:$4 sm:$0xff]   ;;  %3628 = vst [vmem:[#allocation27_spill] sm:$0xff] %v3002_v47 }
  0x80   : > { %2205 = vmatprep.subr.bf16.mxu0 %v2348_v2  ;;  %960 = vperm.xlu0 %2345, %v954_v7   ;;  %v2357_v8 = vld [vmem:[#allocation10 + $0xe4] ss:$16 sps:$4 sm:$0xff]   ;;  %v2362_v11 = vld [vmem:[#allocation10 + $0xe0] ss:$16 sps:$4 sm:$0xff]   ;;  %v2356_v18 = vld [vmem:[%s2943_s16 + $0x8] sm:$0xff]  }
  0x81   : > { %832 = vmatprep.subr.bf16.mxu1 %v2357_v8  ;;  %v2363_v12 = vld [vmem:[#allocation10 + $0xc4] ss:$16 sps:$4 sm:$0xff]   ;;  %v2368_v14 = vld [vmem:[#allocation10 + $0xc0] ss:$16 sps:$4 sm:$0xff]   ;;  %v2359_v19 = vld [vmem:[#allocation10 + $0xe8] ss:$16 sps:$4 sm:$0xff]  }
  0x82   : > { %833 = vmatpush1.bf16.msra.mxu1 %v2362_v11  ;;  %v2354_v16 = vld [vmem:[%s3530_s2] sm:$0xff]   ;;  %v2367_v20 = vld [vmem:[#allocation10 + $0xcc] ss:$16 sps:$4 sm:$0xff]   ;;  %v2365_v21 = vld [vmem:[#allocation10 + $0xc8] ss:$16 sps:$4 sm:$0xff]  }
  0x83   : > { %2206 = vmatpush3.bf16.msra.mxu0 %v2348_v2  ;;  %834 = vmatprep.subr.bf16.mxu1 %v2363_v12  ;;  %v2369_v22 = vld [vmem:[#allocation10 + $0xa4] ss:$16 sps:$4 sm:$0xff]   ;;  %v2373_v23 = vld [vmem:[#allocation10 + $0xac] ss:$16 sps:$4 sm:$0xff]   ;;  %v2371_v24 = vld [vmem:[#allocation10 + $0xa8] ss:$16 sps:$4 sm:$0xff]  }
  0x84   : > { %2207 = vmatprep.subr.bf16.mxu0 %v2349_v4  ;;  %965 = vperm.xlu0 %2345, %v955_v10   ;;  %v2374_v25 = vld [vmem:[#allocation10 + $0xa0] ss:$16 sps:$4 sm:$0xff]   ;;  %v2375_v26 = vld [vmem:[#allocation10 + $0x84] ss:$16 sps:$4 sm:$0xff]   ;;  %v2379_v27 = vld [vmem:[#allocation10 + $0x8c] ss:$16 sps:$4 sm:$0xff]  }
  0x85   : > { %v2377_v28 = vld [vmem:[#allocation10 + $0x88] ss:$16 sps:$4 sm:$0xff]   ;;  %v2380_v29 = vld [vmem:[#allocation10 + $0x80] ss:$16 sps:$4 sm:$0xff]   ;;  %v2381_v30 = vld [vmem:[#allocation10 + $0x64] ss:$16 sps:$4 sm:$0xff]  }
  0x86   : > { %835 = vmatpush1.bf16.msra.mxu1 %v2368_v14  ;;  %v2385_v31 = vld [vmem:[#allocation10 + $0x6c] ss:$16 sps:$4 sm:$0xff]   ;;  %v2383_v32 = vld [vmem:[#allocation10 + $0x68] ss:$16 sps:$4 sm:$0xff]   ;;  %v2386_v33 = vld [vmem:[#allocation10 + $0x60] ss:$16 sps:$4 sm:$0xff]  }
  0x87   : > { %2208 = vmatpush3.bf16.msra.mxu0 %v2349_v4  ;;  %836 = vmatprep.subr.bf16.mxu1 %v2369_v22  ;;  %v2387_v34 = vld [vmem:[#allocation10 + $0x44] ss:$16 sps:$4 sm:$0xff]   ;;  %v2389_v35 = vld [vmem:[#allocation10 + $0x48] ss:$16 sps:$4 sm:$0xff]   ;;  %v2391_v36 = vld [vmem:[#allocation10 + $0x4c] ss:$16 sps:$4 sm:$0xff]  }
  0x88   : > { %2209 = vmatprep.subr.bf16.mxu0 %v2350_v5  ;;  %v2392_v37 = vld [vmem:[#allocation10 + $0x40] ss:$16 sps:$4 sm:$0xff]   ;;  %v2393_v38 = vld [vmem:[#allocation10 + $0x24] ss:$16 sps:$4 sm:$0xff]   ;;  %v2397_v39 = vld [vmem:[#allocation10 + $0x2c] ss:$16 sps:$4 sm:$0xff]  }
  0x89   : > { %v2395_v40 = vld [vmem:[#allocation10 + $0x28] ss:$16 sps:$4 sm:$0xff]   ;;  %v2398_v41 = vld [vmem:[#allocation10 + $0x20] ss:$16 sps:$4 sm:$0xff]   ;;  %v2399_v42 = vld [vmem:[#allocation10 + $0x4] ss:$16 sps:$4 sm:$0xff]  }
  0x8a   : > { %837 = vmatpush1.bf16.msra.mxu1 %v2374_v25  ;;  %v2403_v43 = vld [vmem:[#allocation10 + $0xc] ss:$16 sps:$4 sm:$0xff]   ;;  %v2401_v44 = vld [vmem:[#allocation10 + $0x8] ss:$16 sps:$4 sm:$0xff]   ;;  %v2404_v45 = vld [vmem:[#allocation10] ss:$16 sps:$4 sm:$0xff]  }
  0x8b   : > { %2210 = vmatpush3.bf16.msra.mxu0 %v2350_v5  ;;  %838 = vmatprep.subr.bf16.mxu1 %v2375_v26  ;;  %v3000_v46 = vld [vmem:[#allocation12 + $0x1e8] sm:$0xff]  ;;  %v2106_v50 = vld [vmem:[%s3531_s3] ss:$0 sm:$0xff]  ;;  %v3011_v61 = vld [vmem:[#allocation12 + $0x1f0] sm:$0xff] }
  0x8c   : > { %2211 = vmatprep.subr.bf16.mxu0 %v2351_v9  ;;  %3627 = vst [vmem:[#allocation26_spill] sm:$0xff] %v3000_v46  ;;  %v3009_v60 = vld [vmem:[#allocation12 + $0x1e0] sm:$0xff]  ;;  %v3013_v62 = vld [vmem:[#allocation12 + $0x1c8] sm:$0xff]  ;;  %v3015_v63 = vld [vmem:[#allocation12 + $0x1d8] sm:$0xff] }
  0x8d   : > { %v3017_v0 = vld [vmem:[#allocation12 + $0x1c0] sm:$0xff]  ;;  %v3019_v1 = vld [vmem:[#allocation12 + $0x1d0] sm:$0xff]  ;;  %v3023_v2 = vld [vmem:[#allocation12 + $0x1a8] sm:$0xff] }
  0x8e   : > { %839 = vmatpush1.bf16.msra.mxu1 %v2380_v29  ;;  %v3025_v4 = vld [vmem:[#allocation12 + $0x1b8] sm:$0xff]  ;;  %v3029_v5 = vld [vmem:[#allocation12 + $0x1a0] sm:$0xff]  ;;  %v3031_v6 = vld [vmem:[#allocation12 + $0x1b0] sm:$0xff] }
  0x8f   : > { %2212 = vmatpush3.bf16.msra.mxu0 %v2351_v9  ;;  %840 = vmatprep.subr.bf16.mxu1 %v2381_v30  ;;  %v3035_v7 = vld [vmem:[#allocation12 + $0x188] sm:$0xff]  ;;  %v3037_v8 = vld [vmem:[#allocation12 + $0x198] sm:$0xff]  ;;  %v3041_v9 = vld [vmem:[#allocation12 + $0x180] sm:$0xff] }
  0x90   : > { %2213 = vmatprep.subr.bf16.mxu0 %v2352_v13  ;;  %v3043_v10 = vld [vmem:[#allocation12 + $0x190] sm:$0xff]  ;;  %v3049_v12 = vld [vmem:[#allocation12 + $0x168] sm:$0xff]  ;;  %v3075_v22 = vld [vmem:[#allocation12 + $0x138] sm:$0xff] }
  0x91   : > { %v3085_v25 = vld [vmem:[#allocation12 + $0x108] sm:$0xff]  ;;  %v3087_v26 = vld [vmem:[#allocation12 + $0x118] sm:$0xff] }
  0x92   : > { %841 = vmatpush1.bf16.msra.mxu1 %v2386_v33  ;;  %v3097_v29 = vld [vmem:[#allocation12 + $0xe8] sm:$0xff]  ;;  %v3099_v30 = vld [vmem:[#allocation12 + $0xf8] sm:$0xff] }
  0x93   : > { %2214 = vmatpush3.bf16.msra.mxu0 %v2352_v13  ;;  %842 = vmatprep.subr.bf16.mxu1 %v2387_v34  ;;  %v3051_v13 = vld [vmem:[#allocation12 + $0x178] sm:$0xff]  ;;  %v3109_v33 = vld [vmem:[#allocation12 + $0xc8] sm:$0xff] }
  0x94   : > { %2215 = vmatprep.subr.bf16.mxu0 %v2353_v15  ;;  %v3111_v34 = vld [vmem:[#allocation12 + $0xd8] sm:$0xff] }
  0x96   : > { %843 = vmatpush1.bf16.msra.mxu1 %v2392_v37  ;;  %v3121_v37 = vld [vmem:[#allocation12 + $0xa8] sm:$0xff] }
  0x97   : > { %2216 = vmatpush3.bf16.msra.mxu0 %v2353_v15  ;;  %844 = vmatprep.subr.bf16.mxu1 %v2393_v38  ;;  %3630 = vst [vmem:[#allocation29_spill] sm:$0xff] %v3121_v37  ;;  %v3123_v38 = vld [vmem:[#allocation12 + $0xb8] sm:$0xff] }
  0x98   : > { %2217 = vmatprep.subr.bf16.mxu0 %v2354_v16  ;;  %3631 = vst [vmem:[#allocation30_spill] sm:$0xff] %v3123_v38 }
  0x9a   : > { %845 = vmatpush1.bf16.msra.mxu1 %v2398_v41  ;;  %v3133_v41 = vld [vmem:[#allocation12 + $0x88] sm:$0xff] }
  0x9b   : > { %2218 = vmatpush3.bf16.msra.mxu0 %v2354_v16  ;;  %846 = vmatprep.subr.bf16.mxu1 %v2399_v42  ;;  %v3057_v16 = vld [vmem:[#allocation12 + $0x160] sm:$0xff]  ;;  %3634 = vst [vmem:[#allocation33_spill] sm:$0xff] %v3133_v41  ;;  %v3135_v42 = vld [vmem:[#allocation12 + $0x98] sm:$0xff] }
  0x9c   : > { %885 = vmatprep.subr.bf16.mxu0 %v2361_v17  ;;  %v3059_v17 = vld [vmem:[#allocation12 + $0x170] sm:$0xff]  ;;  %3635 = vst [vmem:[#allocation34_spill] sm:$0xff] %v3135_v42 }
  0x9e   : > { %2220 = vmatmul.mubr.bf16.vlgmr.msra.gmra.mxu0 %v2356_v18  ;;  %847 = vmatpush1.bf16.msra.mxu1 %v2404_v45  ;;  %v3063_v18 = vld [vmem:[#allocation12 + $0x148] sm:$0xff] }
  0x9f   : > { %886 = vmatpush1.bf16.msra.mxu0 %v2359_v19  ;;  %917 = vmatprep.mubr.bf16.mxu0 %v2730_v3  ;;  %v3065_v19 = vld [vmem:[#allocation12 + $0x158] sm:$0xff]  ;;  %v3145_v45 = vld [vmem:[#allocation12 + $0x68] sm:$0xff] }
  0xa0   : > { %887 = vmatprep.subr.bf16.mxu0 %v2367_v20  ;;  %1055 = vmatprep.subr.mxu1 %v3000_v46  ;;  %v3067_v20 = vld [vmem:[#allocation12 + $0x140] sm:$0xff]  ;;  %3638 = vst [vmem:[#allocation37_spill] sm:$0xff] %v3145_v45 }
  0xa3   : > { %888 = vmatpush1.bf16.msra.mxu0 %v2365_v21  ;;  %v3069_v21 = vld [vmem:[#allocation12 + $0x150] sm:$0xff] }
  0xa4   : > { %889 = vmatprep.subr.bf16.mxu0 %v2373_v23  ;;  %v3079_v23 = vld [vmem:[#allocation12 + $0x120] sm:$0xff] }
  0xa7   : > { %890 = vmatpush1.bf16.msra.mxu0 %v2371_v24  ;;  %v3081_v24 = vld [vmem:[#allocation12 + $0x130] sm:$0xff] }
  0xa8   : > { %891 = vmatprep.subr.bf16.mxu0 %v2379_v27  ;;  %v3091_v27 = vld [vmem:[#allocation12 + $0x100] sm:$0xff] }
  0xab   : > { %892 = vmatpush1.bf16.msra.mxu0 %v2377_v28  ;;  %v3093_v28 = vld [vmem:[#allocation12 + $0x110] sm:$0xff] }
  0xac   : > { %893 = vmatprep.subr.bf16.mxu0 %v2385_v31  ;;  %v3103_v31 = vld [vmem:[#allocation12 + $0xe0] sm:$0xff] }
  0xaf   : > { %894 = vmatpush1.bf16.msra.mxu0 %v2383_v32  ;;  %v3105_v32 = vld [vmem:[#allocation12 + $0xf0] sm:$0xff] }
  0xb0   : > { %895 = vmatprep.subr.bf16.mxu0 %v2391_v36  ;;  %v3117_v36 = vld [vmem:[#allocation12 + $0xd0] sm:$0xff] }
  0xb1   : > { %3629 = vst [vmem:[#allocation28_spill] sm:$0xff] %v3117_v36 }
  0xb3   : > { %896 = vmatpush1.bf16.msra.mxu0 %v2389_v35  ;;  %v3115_v35 = vld [vmem:[#allocation12 + $0xc0] sm:$0xff] }
  0xb4   : > { %897 = vmatprep.subr.bf16.mxu0 %v2397_v39  ;;  %v3127_v39 = vld [vmem:[#allocation12 + $0xa0] sm:$0xff] }
  0xb5   : > { %3632 = vst [vmem:[#allocation31_spill] sm:$0xff] %v3127_v39 }
  0xb7   : > { %898 = vmatpush1.bf16.msra.mxu0 %v2395_v40  ;;  %v3129_v40 = vld [vmem:[#allocation12 + $0xb0] sm:$0xff] }
  0xb8   : > { %899 = vmatprep.subr.bf16.mxu0 %v2403_v43  ;;  %3633 = vst [vmem:[#allocation32_spill] sm:$0xff] %v3129_v40  ;;  %v3139_v43 = vld [vmem:[#allocation12 + $0x80] sm:$0xff] }
  0xb9   : > { %3636 = vst [vmem:[#allocation35_spill] sm:$0xff] %v3139_v43 }
  0xbb   : > { %900 = vmatpush1.bf16.msra.mxu0 %v2401_v44  ;;  %v3141_v44 = vld [vmem:[#allocation12 + $0x90] sm:$0xff] }
  0xbc   : > { %1126 = vmatprep.subr.mxu0 %v3002_v47  ;;  %3637 = vst [vmem:[#allocation36_spill] sm:$0xff] %v3141_v44 }
 0x15e   : > { %v2221_v48 = vpop.f32.mrf.mxu0 }
 0x15f   : > { %v606_v56 = vadd.f32 %v2221_v48, %v2106_v50  ;;  %v3147_v48 = vld [vmem:[#allocation12 + $0x78] sm:$0xff] }
 0x160   : > { %v597_v49 = vpop.f32.mrf.mxu0  ;;  %3639 = vst [vmem:[#allocation38_spill] sm:$0xff] %v3147_v48 }
 0x161   : > { %v598_v51 = vadd.f32 %v2106_v50, %v597_v49  ;;  %v3151_v49 = vld [vmem:[#allocation12 + $0x60] sm:$0xff] }
 0x162   : > { %v2222_v52 = vpop.f32.mrf.mxu0  ;;  %3640 = vst [vmem:[#allocation39_spill] sm:$0xff] %v3151_v49 }
 0x163   : > { %2415 = vtanh.f32 %v598_v51  ;;  %v609_v55 = vadd.f32 %v2222_v52, %v2106_v50  ;;  %v3157_v51 = vld [vmem:[#allocation12 + $0x48] sm:$0xff]  ;;  %v3159_v52 = vld [vmem:[#allocation12 + $0x58] sm:$0xff] }
 0x164   : > { %v600_v53 = vpop.f32.mrf.mxu0  ;;  %3642 = vst [vmem:[#allocation41_spill] sm:$0xff] %v3157_v51  ;;  %3643 = vst [vmem:[#allocation42_spill] sm:$0xff] %v3159_v52 }
 0x165   : > { %v601_v54 = vadd.f32 %v2106_v50, %v600_v53  ;;  %v3153_v50 = vld [vmem:[#allocation12 + $0x70] sm:$0xff]  ;;  %v3163_v53 = vld [vmem:[#allocation12 + $0x40] sm:$0xff] }
 0x166   : > { %3641 = vst [vmem:[#allocation40_spill] sm:$0xff] %v3153_v50  ;;  %3644 = vst [vmem:[#allocation43_spill] sm:$0xff] %v3163_v53 }
 0x167   : > { %2417 = vtanh.f32 %v601_v54  ;;  %v3165_v54 = vld [vmem:[#allocation12 + $0x50] sm:$0xff] }
 0x168   : > { %2419 = vtanh.f32 %v609_v55  ;;  %3645 = vst [vmem:[#allocation44_spill] sm:$0xff] %v3165_v54  ;;  %v3169_v55 = vld [vmem:[#allocation12 + $0x28] sm:$0xff] }
 0x169   : > { %2421 = vtanh.f32 %v606_v56  ;;  %3646 = vst [vmem:[#allocation45_spill] sm:$0xff] %v3169_v55  ;;  %v3171_v56 = vld [vmem:[#allocation12 + $0x38] sm:$0xff] }
 0x16a   : > { %3647 = vst [vmem:[#allocation46_spill] sm:$0xff] %v3171_v56 }
 0x170   : > { %v2416_v57 = vpop.eup %2415 }
 0x174   : > { %v2418_v58 = vpop.eup %2417 }
 0x175   : > { %v616_v59 = vpack.c.bf16 %v2418_v58, %v2416_v57  ;;  %v2420_v11 = vpop.eup %2419  ;;  %v1046_v57 = vld [vmem:[#allocation5] sm:$0xff]  ;;  %v3175_v58 = vld [vmem:[#allocation12 + $0x20] sm:$0xff] }
 0x176   : > { %v2422_v14 = vpop.eup %2421  ;;  %3648 = vst [vmem:[#allocation47_spill] sm:$0xff] %v3175_v58 }
 0x177   : > { %865 = vmatmul.mubr.bf16.vlgmr.msra.gmra.mxu1 %v616_v59  ;;  %918 = vmatmul.mubr.bf16.vlgmr.msra.gmra.mxu0 %v616_v59  ;;  %v617_v15 = vpack.c.bf16 %v2420_v11, %v2422_v14  ;;  %v3177_v59 = vld [vmem:[#allocation12 + $0x30] sm:$0xff]  ;;  %v3181_v11 = vld [vmem:[#allocation12 + $0x8] sm:$0xff]  ;;  %v3183_v14 = vld [vmem:[#allocation12 + $0x18] sm:$0xff] }
 0x178   : > { %1056 = vmatpush1.msra.mxu1 %v3009_v60  ;;  %1127 = vmatpush1.msra.mxu0 %v3011_v61  ;;  %3649 = vst [vmem:[#allocation48_spill] sm:$0xff] %v3177_v59  ;;  %3650 = vst [vmem:[#allocation49_spill] sm:$0xff] %v3181_v11 }
 0x179   : > { %1057 = vmatprep.subr.mxu1 %v3013_v62  ;;  %1128 = vmatprep.subr.mxu0 %v3015_v63  ;;  %3651 = vst [vmem:[#allocation50_spill] sm:$0xff] %v3183_v14 }
 0x17a   : > { %1058 = vmatpush1.msra.mxu1 %v3017_v0  ;;  %1129 = vmatpush1.msra.mxu0 %v3019_v1 }
 0x17b   : > { %1059 = vmatprep.subr.mxu1 %v3023_v2  ;;  %1130 = vmatprep.subr.mxu0 %v3025_v4 }
 0x17c   : > { %1060 = vmatpush1.msra.mxu1 %v3029_v5  ;;  %1131 = vmatpush1.msra.mxu0 %v3031_v6 }
 0x17d   : > { %1061 = vmatprep.subr.mxu1 %v3035_v7  ;;  %1132 = vmatprep.subr.mxu0 %v3037_v8 }
 0x17e   : > { %1062 = vmatpush1.msra.mxu1 %v3041_v9  ;;  %1133 = vmatpush1.msra.mxu0 %v3043_v10 }
 0x17f   : > { %874 = vmatprep.mubr.bf16.mxu1 %v2730_v3  ;;  %927 = vmatprep.mubr.bf16.mxu0 %v2730_v3  ;;  %v3073_v3 = vld [vmem:[#allocation12 + $0x128] sm:$0xff] }
 0x180   : > { %1063 = vmatprep.subr.mxu1 %v3049_v12  ;;  %1134 = vmatprep.subr.mxu0 %v3051_v13 }
 0x181   : > { %875 = vmatmul.mubr.bf16.gmra.mxu1 %v617_v15  ;;  %928 = vmatmul.mubr.bf16.gmra.mxu0 %v617_v15  ;;  %v3185_v15 = vpop.permute.xlu0 %960 }
 0x182   : > { %1064 = vmatpush1.msra.mxu1 %v3057_v16  ;;  %1135 = vmatpush1.msra.mxu0 %v3059_v17 }
 0x183   : > { %1065 = vmatprep.subr.mxu1 %v3063_v18  ;;  %1136 = vmatprep.subr.mxu0 %v3065_v19 }
 0x184   : > { %1066 = vmatpush1.msra.mxu1 %v3067_v20  ;;  %1137 = vmatpush1.msra.mxu0 %v3069_v21 }
 0x185   : > { %1067 = vmatprep.subr.mxu1 %v3073_v3  ;;  %1138 = vmatprep.subr.mxu0 %v3075_v22 }
 0x186   : > { %1068 = vmatpush1.msra.mxu1 %v3079_v23  ;;  %1139 = vmatpush1.msra.mxu0 %v3081_v24 }
 0x187   : > { %1069 = vmatprep.subr.mxu1 %v3085_v25  ;;  %1140 = vmatprep.subr.mxu0 %v3087_v26 }
 0x188   : > { %1070 = vmatpush1.msra.mxu1 %v3091_v27  ;;  %1141 = vmatpush1.msra.mxu0 %v3093_v28 }
 0x189   : > { %1071 = vmatprep.subr.mxu1 %v3097_v29  ;;  %1142 = vmatprep.subr.mxu0 %v3099_v30 }
 0x18a   : > { %1072 = vmatpush1.msra.mxu1 %v3103_v31  ;;  %1143 = vmatpush1.msra.mxu0 %v3105_v32 }
 0x18b   : > { %1073 = vmatprep.subr.mxu1 %v3109_v33  ;;  %1144 = vmatprep.subr.mxu0 %v3111_v34 }
 0x18c   : > { %1074 = vmatpush1.msra.mxu1 %v3115_v35  ;;  %1145 = vmatpush1.msra.mxu0 %v3117_v36 }
 0x18d   : > { %1075 = vmatprep.subr.mxu1 %v3121_v37  ;;  %1146 = vmatprep.subr.mxu0 %v3123_v38 }
 0x18e   : > { %1076 = vmatpush1.msra.mxu1 %v3127_v39  ;;  %1147 = vmatpush1.msra.mxu0 %v3129_v40 }
 0x18f   : > { %1077 = vmatprep.subr.mxu1 %v3133_v41  ;;  %1148 = vmatprep.subr.mxu0 %v3135_v42 }
 0x190   : > { %1078 = vmatpush1.msra.mxu1 %v3139_v43  ;;  %1149 = vmatpush1.msra.mxu0 %v3141_v44 }
 0x191   : > { %1079 = vmatprep.subr.mxu1 %v3145_v45  ;;  %1150 = vmatprep.subr.mxu0 %v3147_v48 }
 0x192   : > { %1080 = vmatpush1.msra.mxu1 %v3151_v49  ;;  %1151 = vmatpush1.msra.mxu0 %v3153_v50 }
 0x193   : > { %1081 = vmatprep.subr.mxu1 %v3157_v51  ;;  %1152 = vmatprep.subr.mxu0 %v3159_v52  ;;  %v3189_v51 = vld [vmem:[#allocation12] sm:$0xff]  ;;  %v1049_v52 = vmul.f32 %v1046_v57, %v3185_v15  ;;  %v3655_v57 = vld [vmem:[#allocation42_spill] sm:$0xff] }
 0x194   : > { %1082 = vmatpush1.msra.mxu1 %v3163_v53  ;;  %1153 = vmatpush1.msra.mxu0 %v3165_v54  ;;  %3652 = vst [vmem:[#allocation51_spill] sm:$0xff] %v3189_v51  ;;  %v3194_v53 = vld [vmem:[#allocation12 + $0x10] sm:$0xff]  ;;  %v3555_v54 = vmov 0.0  }
 0x195   : > { %1083 = vmatprep.subr.mxu1 %v3169_v55  ;;  %1154 = vmatprep.subr.mxu0 %v3171_v56  ;;  %3653 = vst [vmem:[#allocation52_spill] sm:$0xff] %v3194_v53 }
 0x196   : > { %1084 = vmatpush1.msra.mxu1 %v3175_v58  ;;  %1155 = vmatpush1.msra.mxu0 %v3177_v59 }
 0x197   : > { %1085 = vmatprep.subr.mxu1 %v3181_v11  ;;  %1156 = vmatprep.subr.mxu0 %v3183_v14 }
 0x198   : > { %1086 = vmatpush1.msra.mxu1 %v3189_v51  ;;  %1119 = vmatprep.mubr.f32.mxu1 %v3555_v54 }
 0x199   : > { %1157 = vmatpush1.msra.mxu0 %v3194_v53  ;;  %1190 = vmatprep.mubr.f32.mxu0 %v3555_v54  ;;  %v3656_v54 = vld [vmem:[#allocation43_spill] sm:$0xff] }
 0x19a   : > { %1120 = vmatmul.mubr.f32.vlgmr.msra.gmra.mxu1 %v1049_v52  ;;  %1191 = vmatmul.mubr.f32.vlgmr.msra.gmra.mxu0 %v1049_v52  ;;  %v3654_v52 = vld [vmem:[#allocation41_spill] sm:$0xff] }
 0x19b   : > { %1236 = vmatprep.subr.mxu1 %v3000_v46  ;;  %1307 = vmatprep.subr.mxu0 %v3002_v47 }
 0x19c   : > { %1237 = vmatpush1.msra.mxu1 %v3009_v60  ;;  %1308 = vmatpush1.msra.mxu0 %v3011_v61 }
 0x19d   : > { %1238 = vmatprep.subr.mxu1 %v3013_v62  ;;  %1309 = vmatprep.subr.mxu0 %v3015_v63 }
 0x19e   : > { %1239 = vmatpush1.msra.mxu1 %v3017_v0  ;;  %1310 = vmatpush1.msra.mxu0 %v3019_v1 }
 0x19f   : > { %1240 = vmatprep.subr.mxu1 %v3023_v2  ;;  %1311 = vmatprep.subr.mxu0 %v3025_v4 }
 0x1a0   : > { %1241 = vmatpush1.msra.mxu1 %v3029_v5  ;;  %1312 = vmatpush1.msra.mxu0 %v3031_v6 }
 0x1a1   : > { %1242 = vmatprep.subr.mxu1 %v3035_v7  ;;  %1313 = vmatprep.subr.mxu0 %v3037_v8 }
 0x1a2   : > { %1243 = vmatpush1.msra.mxu1 %v3041_v9  ;;  %1314 = vmatpush1.msra.mxu0 %v3043_v10 }
 0x1a3   : > { %1244 = vmatprep.subr.mxu1 %v3049_v12  ;;  %1315 = vmatprep.subr.mxu0 %v3051_v13 }
 0x1a4   : > { %1245 = vmatpush1.msra.mxu1 %v3057_v16  ;;  %1316 = vmatpush1.msra.mxu0 %v3059_v17 }
 0x1a5   : > { %1246 = vmatprep.subr.mxu1 %v3063_v18  ;;  %1317 = vmatprep.subr.mxu0 %v3065_v19 }
 0x1a6   : > { %1247 = vmatpush1.msra.mxu1 %v3067_v20  ;;  %1318 = vmatpush1.msra.mxu0 %v3069_v21 }
 0x1a7   : > { %1248 = vmatprep.subr.mxu1 %v3073_v3  ;;  %1319 = vmatprep.subr.mxu0 %v3075_v22 }
 0x1a8   : > { %1249 = vmatpush1.msra.mxu1 %v3079_v23  ;;  %1320 = vmatpush1.msra.mxu0 %v3081_v24 }
 0x1a9   : > { %1250 = vmatprep.subr.mxu1 %v3085_v25  ;;  %1321 = vmatprep.subr.mxu0 %v3087_v26 }
 0x1aa   : > { %1251 = vmatpush1.msra.mxu1 %v3091_v27  ;;  %1322 = vmatpush1.msra.mxu0 %v3093_v28 }
 0x1ab   : > { %1252 = vmatprep.subr.mxu1 %v3097_v29  ;;  %1323 = vmatprep.subr.mxu0 %v3099_v30 }
 0x1ac   : > { %1253 = vmatpush1.msra.mxu1 %v3103_v31  ;;  %1324 = vmatpush1.msra.mxu0 %v3105_v32 }
 0x1ad   : > { %1254 = vmatprep.subr.mxu1 %v3109_v33  ;;  %1325 = vmatprep.subr.mxu0 %v3111_v34 }
 0x1ae   : > { %1255 = vmatpush1.msra.mxu1 %v3115_v35  ;;  %1326 = vmatpush1.msra.mxu0 %v3117_v36 }
 0x1af   : > { %1256 = vmatprep.subr.mxu1 %v3121_v37  ;;  %1327 = vmatprep.subr.mxu0 %v3123_v38 }
 0x1b0   : > { %1257 = vmatpush1.msra.mxu1 %v3127_v39  ;;  %1328 = vmatpush1.msra.mxu0 %v3129_v40 }
 0x1b1   : > { %1258 = vmatprep.subr.mxu1 %v3133_v41  ;;  %1329 = vmatprep.subr.mxu0 %v3135_v42  ;;  %v3657_v42 = vld [vmem:[#allocation44_spill] sm:$0xff] }
 0x1b2   : > { %1259 = vmatpush1.msra.mxu1 %v3139_v43  ;;  %1330 = vmatpush1.msra.mxu0 %v3141_v44 }
 0x1b3   : > { %1260 = vmatprep.subr.mxu1 %v3145_v45  ;;  %1331 = vmatprep.subr.mxu0 %v3147_v48 }
 0x1b4   : > { %1261 = vmatpush1.msra.mxu1 %v3151_v49  ;;  %1332 = vmatpush1.msra.mxu0 %v3153_v50 }
 0x1b5   : > { %1262 = vmatprep.subr.mxu1 %v3654_v52  ;;  %1333 = vmatprep.subr.mxu0 %v3655_v57  ;;  %v3658_v57 = vmov 0.0  }
 0x1b6   : > { %1263 = vmatpush1.msra.mxu1 %v3656_v54  ;;  %1334 = vmatpush1.msra.mxu0 %v3657_v42 }
 0x1b7   : > { %1264 = vmatprep.subr.mxu1 %v3169_v55  ;;  %1335 = vmatprep.subr.mxu0 %v3171_v56  ;;  %v956_v56 = vld [vmem:[%s2962_s29 + $0x10] sm:$0xff] }
 0x1b8   : > { %1265 = vmatpush1.msra.mxu1 %v3175_v58  ;;  %1336 = vmatpush1.msra.mxu0 %v3177_v59  ;;  %v957_v58 = vld [vmem:[%s2962_s29 + $0x18] sm:$0xff]  ;;  %v652_v59 = vlaneseq  ;;  %s2732_s29 = smov [#allocation16]  }
 0x1b9   : > { %1266 = vmatprep.subr.mxu1 %v3181_v11  ;;  %1337 = vmatprep.subr.mxu0 %v3183_v14  ;;  %s1945_s23 = sshll.u32 %s2732_s29, 4  ;;  %s1946_s23 = int_to_ptr.vmem [resolvable:$true] %s1945_s23 }
 0x1ba   : > { %1267 = vmatpush1.msra.mxu1 %v3189_v51  ;;  %1300 = vmatprep.mubr.f32.mxu1 %v3658_v57  ;;  %v653_v11 = vshrl.u32 %v652_v59, 7  ;;  %v650_v51 = vld [vmem:[%s3534_s6] sm:$0xf]  ;;  %s2593_s15 = scalar_lea.vmem %s1946_s23, 128  ;;  %p2600_p6 = scmp.lt.s32.totalorder %s1946_s23, %s1946_s23 }
 0x1bb   : > { %1338 = vmatpush1.msra.mxu0 %v3194_v53  ;;  %1371 = vmatprep.mubr.f32.mxu0 %v3658_v57  ;;  %p2594_p11 = scmp.ne.s32.totalorder %s1946_s23, %s2593_s15  ;;  %p2601_p10 = scmp.lt.s32.totalorder %s2593_s15, %s2593_s15 }
 0x1bc   : > { %1418 = vmatprep.subr.mxu1 %v3000_v46  ;;  %1489 = vmatprep.subr.mxu0 %v3002_v47  ;;  %v654_v55 = vsub.s32 0, %v653_v11  ;;  %v662_v14 = vsub.s32 2, %v653_v11  ;;  %v658_v54 = vsub.s32 1, %v653_v11  ;;  %v666_v57 = vsub.s32 3, %v653_v11 }
 0x1bd   : > { %970 = vperm.xlu1 %2346, %v956_v56   ;;  %p2595_p1 = pnand %p2594_p11, %p3729_p8  ;;  %p2602_p7 = por %p2601_p10, %p2600_p6 }
 0x1be   : > { %v655_v50 = vrot.slane %v650_v51, %v654_v55  ;;  %v663_v47 = vrot.slane %v650_v51, %v662_v14  ;;  %v659_v48 = vrot.slane %v650_v51, %v658_v54 }
 0x1bf   : > { %p2596_p5 = pneg %p2595_p1 }
 0x1c1   : > { %975 = vperm.xlu1 %2346, %v957_v58   ;;  %v667_v58 = vrot.slane %v650_v51, %v666_v57  ;;  %p2603_p4 = pnand %p2602_p7, %p2596_p5 }
 0x237   : > { %v866_v42 = vpop.f32.mrf.mxu1  ;;  %v919_v53 = vpop.f32.mrf.mxu0 }
 0x239   : > { %v868_v52 = vpop.f32.mrf.mxu1  ;;  %v921_v46 = vpop.f32.mrf.mxu0 }
 0x23b   : > { %v870_v49 = vpop.f32.mrf.mxu1  ;;  %v923_v56 = vpop.f32.mrf.mxu0 }
 0x23c   : > { %v3275_v45 = vadd.f32 %v870_v49, %v655_v50  ;;  %v3277_v59 = vadd.f32 %v923_v56, %v663_v47 }
 0x23d   : > { %v872_v44 = vpop.f32.mrf.mxu1  ;;  %v925_v43 = vpop.f32.mrf.mxu0 }
 0x23e   : > { %3659 = vst [vmem:[#allocation53_spill] sm:$0xff] %v3275_v45  ;;  %3660 = vst [vmem:[#allocation54_spill] sm:$0xff] %v3277_v59  ;;  %v3279_v41 = vadd.f32 %v872_v44, %v659_v48  ;;  %v3281_v40 = vadd.f32 %v925_v43, %v667_v58 }
 0x240   : > { %3661 = vst [vmem:[#allocation55_spill] sm:$0xff] %v3279_v41  ;;  %3662 = vst [vmem:[#allocation56_spill] sm:$0xff] %v3281_v40 }
 0x241   : > { %v876_v39 = vpop.f32.mrf.mxu1  ;;  %v929_v11 = vpop.f32.mrf.mxu0 }
 0x242   : > { %v3283_v38 = vadd.f32 %v876_v39, %v655_v50  ;;  %v3285_v55 = vadd.f32 %v929_v11, %v663_v47  ;;  %v867_v11 = vadd.f32 %v866_v42, %v655_v50 }
 0x243   : > { %v878_v14 = vpop.f32.mrf.mxu1  ;;  %v931_v37 = vpop.f32.mrf.mxu0 }
 0x244   : > { %3663 = vst [vmem:[#allocation57_spill] sm:$0xff] %v3283_v38  ;;  %3664 = vst [vmem:[#allocation58_spill] sm:$0xff] %v3285_v55  ;;  %v3287_v54 = vadd.f32 %v878_v14, %v659_v48  ;;  %v3289_v49 = vadd.f32 %v931_v37, %v667_v58  ;;  %v869_v38 = vadd.f32 %v868_v52, %v659_v48 }
 0x245   : > { %v880_v51 = vpop.f32.mrf.mxu1  ;;  %v933_v57 = vpop.f32.mrf.mxu0 }
 0x246   : > { %3665 = vst [vmem:[#allocation59_spill] sm:$0xff] %v3287_v54  ;;  %3666 = vst [vmem:[#allocation60_spill] sm:$0xff] %v3289_v49  ;;  %v3291_v56 = vadd.f32 %v880_v51, %v655_v50  ;;  %v3293_v44 = vadd.f32 %v933_v57, %v663_v47  ;;  %v922_v57 = vadd.f32 %v921_v46, %v667_v58 }
 0x247   : > { %v882_v43 = vpop.f32.mrf.mxu1  ;;  %v935_v59 = vpop.f32.mrf.mxu0 }
 0x248   : > { %3667 = vst [vmem:[#allocation61_spill] sm:$0xff] %v3291_v56  ;;  %3668 = vst [vmem:[#allocation62_spill] sm:$0xff] %v3293_v44  ;;  %v3295_v40 = vadd.f32 %v882_v43, %v659_v48  ;;  %v3297_v39 = vadd.f32 %v935_v59, %v667_v58  ;;  %v920_v56 = vadd.f32 %v919_v53, %v663_v47 }
 0x24a   : > { %3669 = vst [vmem:[#allocation63_spill] sm:$0xff] %v3295_v40  ;;  %3670 = vst [vmem:[#allocation64_spill] sm:$0xff] %v3297_v39 }
 0x25a   : > { %v1121_v55 = vpop.f32.mrf.mxu1  ;;  %v1192_v49 = vpop.f32.mrf.mxu0 }
 0x25b   : > { %v1197_v41 = vadd.f32 %v1121_v55, %v867_v11  ;;  %v1199_v40 = vadd.f32 %v1192_v49, %v920_v56  ;;  %v966_v55 = vpop.permute.xlu0 %965  ;;  %v3673_v11 = vld [vmem:[#allocation30_spill] sm:$0xff] }
 0x25c   : > { %v1123_v14 = vpop.f32.mrf.mxu1  ;;  %v1194_v51 = vpop.f32.mrf.mxu0 }
 0x25d   : > { %v2149_v54 = vmul.f32 -1.442695, %v1197_v41  ;;  %v1198_v37 = vadd.f32 %v1123_v14, %v869_v38  ;;  %v1200_v44 = vadd.f32 %v1194_v51, %v922_v57  ;;  %v1047_v41 = vld [vmem:[#allocation6] sm:$0xff]  ;;  %v3676_v51 = vld [vmem:[#allocation33_spill] sm:$0xff]  ;;  %v3677_v57 = vld [vmem:[#allocation34_spill] sm:$0xff] }
 0x25e   : > { %v3674_v14 = vld [vmem:[#allocation31_spill] sm:$0xff] }
 0x25f   : > { %2423 = vpow2.f32 %v2149_v54  ;;  %v2150_v45 = vmul.f32 -1.442695, %v1198_v37  ;;  %v2151_v36 = vmul.f32 -1.442695, %v1200_v44  ;;  %v3675_v37 = vld [vmem:[#allocation32_spill] sm:$0xff] }
 0x261   : > { %2425 = vpow2.f32 %v2150_v45  ;;  %v1050_v45 = vmul.f32 %v1047_v41, %v3185_v15  ;;  %v3671_v15 = vld [vmem:[#allocation28_spill] sm:$0xff]  ;;  %v3681_v41 = vld [vmem:[#allocation38_spill] sm:$0xff] }
 0x262   : > { %2427 = vpow2.f32 %v2151_v36 }
 0x26c   : > { %v2424_v43 = vpop.eup %2423 }
 0x26d   : > { %v1204_v59 = vadd.f32 1.0, %v2424_v43  ;;  %v3678_v43 = vld [vmem:[#allocation35_spill] sm:$0xff] }
 0x26e   : > { %v2426_v39 = vpop.eup %2425 }
 0x26f   : > { %2429 = vrcp.f32 %v1204_v59  ;;  %v1210_v42 = vadd.f32 1.0, %v2426_v39  ;;  %v2428_v38 = vpop.eup %2427  ;;  %v3672_v39 = vld [vmem:[#allocation29_spill] sm:$0xff]  ;;  %v3679_v59 = vld [vmem:[#allocation36_spill] sm:$0xff] }
 0x270   : > { %2431 = vtanh.f32 %v1199_v40  ;;  %v1217_v46 = vadd.f32 1.0, %v2428_v38  ;;  %v3682_v38 = vld [vmem:[#allocation39_spill] sm:$0xff] }
 0x271   : > { %2433 = vrcp.f32 %v1210_v42  ;;  %v3680_v42 = vld [vmem:[#allocation37_spill] sm:$0xff] }
 0x272   : > { %2435 = vrcp.f32 %v1217_v46  ;;  %v3687_v46 = vld [vmem:[#allocation44_spill] sm:$0xff] }
 0x27c   : > { %v2430_v48 = vpop.eup %2429 }
 0x27d   : > { %v2432_v50 = vpop.eup %2431 }
 0x27e   : > { %v2434_v52 = vpop.eup %2433  ;;  %v1221_v58 = vmul.f32 %v2432_v50, %v2430_v48  ;;  %v3683_v48 = vld [vmem:[#allocation40_spill] sm:$0xff]  ;;  %v3684_v50 = vld [vmem:[#allocation41_spill] sm:$0xff] }
 0x27f   : > { %v1220_v47 = vmul.f32 %v2434_v52, %v1050_v45  ;;  %v2436_v36 = vpop.eup %2435  ;;  %v3685_v45 = vld [vmem:[#allocation42_spill] sm:$0xff]  ;;  %v3686_v52 = vld [vmem:[#allocation43_spill] sm:$0xff] }
 0x281   : > { %v1222_v53 = vadd.f32 %v1221_v58, %v1220_v47  ;;  %v3688_v58 = vld [vmem:[#allocation45_spill] sm:$0xff]  ;;  %v3689_v47 = vld [vmem:[#allocation46_spill] sm:$0xff] }
 0x283   : > { %2437 = vtanh.f32 %v1222_v53  ;;  %v3300_v54 = vmul.f32 %v1222_v53, %v966_v55  ;;  %v3690_v53 = vld [vmem:[#allocation47_spill] sm:$0xff] }
 0x290   : > { %v2438_v49 = vpop.eup %2437 }
 0x291   : > { %v1224_v40 = vmul.f32 %v2438_v49, %v2436_v36  ;;  %v3692_v36 = vld [vmem:[#allocation49_spill] sm:$0xff]  ;;  %v3693_v49 = vld [vmem:[#allocation50_spill] sm:$0xff] }
 0x293   : > { %v1225_v56 = vpack.c.bf16 %v1224_v40, %v1224_v40  ;;  %v1229_v44 = vmul.f32 %v1224_v40, %v966_v55  ;;  %v3691_v55 = vld [vmem:[#allocation48_spill] sm:$0xff]  ;;  %v3694_v40 = vld [vmem:[#allocation51_spill] sm:$0xff] }
 0x295   : > { %1226 = vst [vmem:[#allocation4] sm:$0xf] %v1225_v56  ;;  %1301 = vmatmul.mubr.f32.vlgmr.msra.gmra.mxu1 %v1229_v44  ;;  %1372 = vmatmul.mubr.f32.vlgmr.msra.gmra.mxu0 %v1229_v44  ;;  %v3695_v56 = vmov 0.0   ;;  %v3696_v44 = vld [vmem:[#allocation52_spill] sm:$0xff] }
 0x296   : > { %1419 = vmatpush1.msra.mxu1 %v3009_v60  ;;  %1490 = vmatpush1.msra.mxu0 %v3011_v61 }
 0x297   : > { %1420 = vmatprep.subr.mxu1 %v3013_v62  ;;  %1491 = vmatprep.subr.mxu0 %v3015_v63 }
 0x298   : > { %1421 = vmatpush1.msra.mxu1 %v3017_v0  ;;  %1492 = vmatpush1.msra.mxu0 %v3019_v1 }
 0x299   : > { %1422 = vmatprep.subr.mxu1 %v3023_v2  ;;  %1493 = vmatprep.subr.mxu0 %v3025_v4 }
 0x29a   : > { %1423 = vmatpush1.msra.mxu1 %v3029_v5  ;;  %1494 = vmatpush1.msra.mxu0 %v3031_v6 }
 0x29b   : > { %1424 = vmatprep.subr.mxu1 %v3035_v7  ;;  %1495 = vmatprep.subr.mxu0 %v3037_v8 }
 0x29c   : > { %1425 = vmatpush1.msra.mxu1 %v3041_v9  ;;  %1496 = vmatpush1.msra.mxu0 %v3043_v10 }
 0x29d   : > { %1426 = vmatprep.subr.mxu1 %v3049_v12  ;;  %1497 = vmatprep.subr.mxu0 %v3051_v13 }
 0x29e   : > { %1427 = vmatpush1.msra.mxu1 %v3057_v16  ;;  %1498 = vmatpush1.msra.mxu0 %v3059_v17 }
 0x29f   : > { %1428 = vmatprep.subr.mxu1 %v3063_v18  ;;  %1499 = vmatprep.subr.mxu0 %v3065_v19 }
 0x2a0   : > { %1429 = vmatpush1.msra.mxu1 %v3067_v20  ;;  %1500 = vmatpush1.msra.mxu0 %v3069_v21 }
 0x2a1   : > { %1430 = vmatprep.subr.mxu1 %v3073_v3  ;;  %1501 = vmatprep.subr.mxu0 %v3075_v22 }
 0x2a2   : > { %1431 = vmatpush1.msra.mxu1 %v3079_v23  ;;  %1502 = vmatpush1.msra.mxu0 %v3081_v24 }
 0x2a3   : > { %1432 = vmatprep.subr.mxu1 %v3085_v25  ;;  %1503 = vmatprep.subr.mxu0 %v3087_v26 }
 0x2a4   : > { %1433 = vmatpush1.msra.mxu1 %v3091_v27  ;;  %1504 = vmatpush1.msra.mxu0 %v3093_v28 }
 0x2a5   : > { %1434 = vmatprep.subr.mxu1 %v3097_v29  ;;  %1505 = vmatprep.subr.mxu0 %v3099_v30 }
 0x2a6   : > { %1435 = vmatpush1.msra.mxu1 %v3103_v31  ;;  %1506 = vmatpush1.msra.mxu0 %v3105_v32 }
 0x2a7   : > { %1436 = vmatprep.subr.mxu1 %v3109_v33  ;;  %1507 = vmatprep.subr.mxu0 %v3111_v34 }
 0x2a8   : > { %1437 = vmatpush1.msra.mxu1 %v3115_v35  ;;  %1508 = vmatpush1.msra.mxu0 %v3671_v15 }
 0x2a9   : > { %1438 = vmatprep.subr.mxu1 %v3672_v39  ;;  %1509 = vmatprep.subr.mxu0 %v3673_v11 }
 0x2aa   : > { %1439 = vmatpush1.msra.mxu1 %v3674_v14  ;;  %1510 = vmatpush1.msra.mxu0 %v3675_v37 }
 0x2ab   : > { %1440 = vmatprep.subr.mxu1 %v3676_v51  ;;  %1511 = vmatprep.subr.mxu0 %v3677_v57 }
 0x2ac   : > { %1441 = vmatpush1.msra.mxu1 %v3678_v43  ;;  %1512 = vmatpush1.msra.mxu0 %v3679_v59 }
 0x2ad   : > { %1442 = vmatprep.subr.mxu1 %v3680_v42  ;;  %1513 = vmatprep.subr.mxu0 %v3681_v41  ;;  %v3702_v41 = vld [vmem:[#allocation54_spill] sm:$0xff] }
 0x2ae   : > { %1443 = vmatpush1.msra.mxu1 %v3682_v38  ;;  %1514 = vmatpush1.msra.mxu0 %v3683_v48  ;;  %v3701_v38 = vld [vmem:[#allocation56_spill] sm:$0xff] }
 0x2af   : > { %1444 = vmatprep.subr.mxu1 %v3684_v50  ;;  %1515 = vmatprep.subr.mxu0 %v3685_v45 }
 0x2b0   : > { %1445 = vmatpush1.msra.mxu1 %v3686_v52  ;;  %1516 = vmatpush1.msra.mxu0 %v3687_v46  ;;  %v3697_v46 = vld [vmem:[#allocation26_spill] sm:$0xff] }
 0x2b1   : > { %1446 = vmatprep.subr.mxu1 %v3688_v58  ;;  %1517 = vmatprep.subr.mxu0 %v3689_v47  ;;  %v3698_v58 = vld [vmem:[#allocation27_spill] sm:$0xff] }
 0x2b2   : > { %1447 = vmatpush1.msra.mxu1 %v3690_v53  ;;  %1518 = vmatpush1.msra.mxu0 %v3691_v55  ;;  %v3699_v53 = vld [vmem:[#allocation53_spill] sm:$0xff] }
 0x2b3   : > { %1448 = vmatprep.subr.mxu1 %v3692_v36  ;;  %1519 = vmatprep.subr.mxu0 %v3693_v49  ;;  %v3700_v36 = vld [vmem:[#allocation55_spill] sm:$0xff] }
 0x2b4   : > { %1449 = vmatpush1.msra.mxu1 %v3694_v40  ;;  %1482 = vmatprep.mubr.f32.mxu1 %v3695_v56 }
 0x2b5   : > { %1520 = vmatpush1.msra.mxu0 %v3696_v44  ;;  %1553 = vmatprep.mubr.f32.mxu0 %v3695_v56 }
 0x2b6   : > { %1600 = vmatprep.subr.mxu1 %v3697_v46  ;;  %1671 = vmatprep.subr.mxu0 %v3698_v58 }
 0x355   : > { %v1302_v47 = vpop.f32.mrf.mxu1  ;;  %v1373_v49 = vpop.f32.mrf.mxu0 }
 0x356   : > { %v1378_v52 = vadd.f32 %v1302_v47, %v3699_v53  ;;  %v1380_v56 = vadd.f32 %v1373_v49, %v3702_v41 }
 0x357   : > { %v1304_v55 = vpop.f32.mrf.mxu1  ;;  %v1375_v48 = vpop.f32.mrf.mxu0 }
 0x358   : > { %v2152_v45 = vmul.f32 -1.442695, %v1378_v52  ;;  %v1379_v50 = vadd.f32 %v1304_v55, %v3700_v36  ;;  %v1381_v44 = vadd.f32 %v1375_v48, %v3701_v38 }
 0x35a   : > { %2439 = vpow2.f32 %v2152_v45  ;;  %v2153_v40 = vmul.f32 -1.442695, %v1379_v50  ;;  %v2154_v42 = vmul.f32 -1.442695, %v1381_v44 }
 0x35c   : > { %2441 = vpow2.f32 %v2153_v40 }
 0x35d   : > { %2443 = vtanh.f32 %v1380_v56 }
 0x35e   : > { %2445 = vpow2.f32 %v2154_v42  ;;  %v3376_v42 = vpop.permute.xlu1 %970 }
 0x362   : > { %v976_v44 = vpop.permute.xlu1 %975 }
 0x367   : > { %v2440_v46 = vpop.eup %2439 }
 0x368   : > { %v1385_v59 = vadd.f32 1.0, %v2440_v46 }
 0x369   : > { %v2442_v58 = vpop.eup %2441 }
 0x36a   : > { %2447 = vrcp.f32 %v1385_v59  ;;  %v1391_v47 = vadd.f32 1.0, %v2442_v58  ;;  %v2444_v52 = vpop.eup %2443 }
 0x36b   : > { %v2446_v53 = vpop.eup %2445 }
 0x36c   : > { %2449 = vrcp.f32 %v1391_v47  ;;  %v1398_v36 = vadd.f32 1.0, %v2446_v53 }
 0x36e   : > { %2451 = vrcp.f32 %v1398_v36  ;;  %v2407_v36 = vld [vmem:[#allocation13 + $0x30] sm:$0xff]  }
 0x377   : > { %v2448_v45 = vpop.eup %2447 }
 0x378   : > { %v1402_v55 = vmul.f32 %v2448_v45, %v2444_v52 }
 0x379   : > { %v2450_v50 = vpop.eup %2449 }
 0x37a   : > { %v1401_v40 = vmul.f32 %v2450_v50, %v3300_v54  ;;  %v2406_v50 = vld [vmem:[#allocation13 + $0x38] sm:$0xff]  }
 0x37b   : > { %v2452_v41 = vpop.eup %2451 }
 0x37c   : > { %v3373_v38 = vadd.f32 %v1402_v55, %v1401_v40  ;;  %v2408_v40 = vld [vmem:[#allocation13 + $0x28] sm:$0xff]  }
 0x37e   : > { %2453 = vtanh.f32 %v3373_v38 }
 0x38b   : > { %v2454_v48 = vpop.eup %2453 }
 0x38c   : > { %v1405_v49 = vmul.f32 %v2454_v48, %v2452_v41  ;;  %v2410_v41 = vld [vmem:[#allocation13 + $0x18] sm:$0xff]   ;;  %v2411_v48 = vld [vmem:[#allocation13 + $0x10] sm:$0xff]  }
 0x38e   : > { %v1406_v59 = vpack.c.bf16 %v1405_v49, %v1405_v49  ;;  %v1411_v56 = vmul.f32 %v1405_v49, %v3376_v42  ;;  %v2412_v49 = vld [vmem:[#allocation13 + $0x8] sm:$0xff]  }
 0x390   : > { %1408 = vst [vmem:[#allocation4 + $0x4] sm:$0xf] %v1406_v59  ;;  %1483 = vmatmul.mubr.f32.vlgmr.msra.gmra.mxu1 %v1411_v56  ;;  %1554 = vmatmul.mubr.f32.vlgmr.msra.gmra.mxu0 %v1411_v56  ;;  %v3725_v56 = vld [vmem:[#allocation61_spill] sm:$0xff] }
 0x391   : > { %1601 = vmatpush1.msra.mxu1 %v3009_v60  ;;  %1672 = vmatpush1.msra.mxu0 %v3011_v61  ;;  %v3703_v60 = vld [vmem:[#allocation36_spill] sm:$0xff]  ;;  %v3704_v61 = vld [vmem:[#allocation37_spill] sm:$0xff] }
 0x392   : > { %1602 = vmatprep.subr.mxu1 %v3013_v62  ;;  %1673 = vmatprep.subr.mxu0 %v3015_v63  ;;  %v3705_v62 = vld [vmem:[#allocation38_spill] sm:$0xff]  ;;  %v3706_v63 = vld [vmem:[#allocation39_spill] sm:$0xff] }
 0x393   : > { %1603 = vmatpush1.msra.mxu1 %v3017_v0  ;;  %1674 = vmatpush1.msra.mxu0 %v3019_v1  ;;  %v3707_v0 = vld [vmem:[#allocation40_spill] sm:$0xff]  ;;  %v3708_v1 = vld [vmem:[#allocation41_spill] sm:$0xff] }
 0x394   : > { %1604 = vmatprep.subr.mxu1 %v3023_v2  ;;  %1675 = vmatprep.subr.mxu0 %v3025_v4  ;;  %v3709_v2 = vld [vmem:[#allocation42_spill] sm:$0xff]  ;;  %v3710_v4 = vld [vmem:[#allocation43_spill] sm:$0xff] }
 0x395   : > { %1605 = vmatpush1.msra.mxu1 %v3029_v5  ;;  %1676 = vmatpush1.msra.mxu0 %v3031_v6  ;;  %v3711_v5 = vld [vmem:[#allocation44_spill] sm:$0xff]  ;;  %v3712_v6 = vld [vmem:[#allocation45_spill] sm:$0xff] }
 0x396   : > { %1606 = vmatprep.subr.mxu1 %v3035_v7  ;;  %1677 = vmatprep.subr.mxu0 %v3037_v8  ;;  %v3713_v7 = vld [vmem:[#allocation46_spill] sm:$0xff]  ;;  %v3714_v8 = vld [vmem:[#allocation47_spill] sm:$0xff] }
 0x397   : > { %1607 = vmatpush1.msra.mxu1 %v3041_v9  ;;  %1678 = vmatpush1.msra.mxu0 %v3043_v10  ;;  %v3715_v9 = vld [vmem:[#allocation48_spill] sm:$0xff]  ;;  %v3716_v10 = vld [vmem:[#allocation49_spill] sm:$0xff] }
 0x398   : > { %1608 = vmatprep.subr.mxu1 %v3049_v12  ;;  %1679 = vmatprep.subr.mxu0 %v3051_v13  ;;  %v3717_v12 = vld [vmem:[#allocation50_spill] sm:$0xff]  ;;  %v3718_v13 = vld [vmem:[#allocation51_spill] sm:$0xff]  ;;  %v2405_v55 = vld [vmem:[#allocation4] sm:$0xff]  }
 0x399   : > { %1609 = vmatpush1.msra.mxu1 %v3057_v16  ;;  %1680 = vmatpush1.msra.mxu0 %v3059_v17  ;;  %v3719_v16 = vmov 0.0   ;;  %v3720_v17 = vld [vmem:[#allocation52_spill] sm:$0xff] }
 0x39a   : > { %1610 = vmatprep.subr.mxu1 %v3063_v18  ;;  %1681 = vmatprep.subr.mxu0 %v3065_v19  ;;  %v3721_v19 = vld [vmem:[#allocation57_spill] sm:$0xff] }
 0x39b   : > { %1611 = vmatpush1.msra.mxu1 %v3067_v20  ;;  %1682 = vmatpush1.msra.mxu0 %v3069_v21 }
 0x39c   : > { %1612 = vmatprep.subr.mxu1 %v3073_v3  ;;  %1683 = vmatprep.subr.mxu0 %v3075_v22  ;;  %v3722_v22 = vld [vmem:[#allocation59_spill] sm:$0xff] }
 0x39d   : > { %1613 = vmatpush1.msra.mxu1 %v3079_v23  ;;  %1684 = vmatpush1.msra.mxu0 %v3081_v24 }
 0x39e   : > { %1614 = vmatprep.subr.mxu1 %v3085_v25  ;;  %1685 = vmatprep.subr.mxu0 %v3087_v26 }
 0x39f   : > { %1615 = vmatpush1.msra.mxu1 %v3091_v27  ;;  %1686 = vmatpush1.msra.mxu0 %v3093_v28  ;;  %v3723_v27 = vld [vmem:[#allocation60_spill] sm:$0xff] }
 0x3a0   : > { %1616 = vmatprep.subr.mxu1 %v3097_v29  ;;  %1687 = vmatprep.subr.mxu0 %v3099_v30  ;;  %v3724_v29 = vld [vmem:[#allocation58_spill] sm:$0xff] }
 0x3a1   : > { %1617 = vmatpush1.msra.mxu1 %v3103_v31  ;;  %1688 = vmatpush1.msra.mxu0 %v3105_v32 }
 0x3a2   : > { %1618 = vmatprep.subr.mxu1 %v3109_v33  ;;  %1689 = vmatprep.subr.mxu0 %v3111_v34 }
 0x3a3   : > { %1619 = vmatpush1.msra.mxu1 %v3115_v35  ;;  %1690 = vmatpush1.msra.mxu0 %v3671_v15 }
 0x3a4   : > { %1620 = vmatprep.subr.mxu1 %v3672_v39  ;;  %1691 = vmatprep.subr.mxu0 %v3673_v11  ;;  %v1412_v11 = vmul.f32 %v3373_v38, %v3376_v42  ;;  %v2409_v38 = vld [vmem:[#allocation13 + $0x20] sm:$0xff]  }
 0x3a5   : > { %1621 = vmatpush1.msra.mxu1 %v3674_v14  ;;  %1692 = vmatpush1.msra.mxu0 %v3675_v37  ;;  %v2413_v42 = vld [vmem:[#allocation13] sm:$0xff]  }
 0x3a6   : > { %1622 = vmatprep.subr.mxu1 %v3676_v51  ;;  %1693 = vmatprep.subr.mxu0 %v3677_v57 }
 0x3a7   : > { %1623 = vmatpush1.msra.mxu1 %v3678_v43  ;;  %1694 = vmatpush1.msra.mxu0 %v3703_v60 }
 0x3a8   : > { %1624 = vmatprep.subr.mxu1 %v3704_v61  ;;  %1695 = vmatprep.subr.mxu0 %v3705_v62 }
 0x3a9   : > { %1625 = vmatpush1.msra.mxu1 %v3706_v63  ;;  %1696 = vmatpush1.msra.mxu0 %v3707_v0  ;;  %v3726_v63 = vld [vmem:[#allocation63_spill] sm:$0xff] }
 0x3aa   : > { %1626 = vmatprep.subr.mxu1 %v3708_v1  ;;  %1697 = vmatprep.subr.mxu0 %v3709_v2 }
 0x3ab   : > { %1627 = vmatpush1.msra.mxu1 %v3710_v4  ;;  %1698 = vmatpush1.msra.mxu0 %v3711_v5  ;;  %v3727_v5 = vld [vmem:[#allocation64_spill] sm:$0xff] }
 0x3ac   : > { %1628 = vmatprep.subr.mxu1 %v3712_v6  ;;  %1699 = vmatprep.subr.mxu0 %v3713_v7  ;;  %v3728_v7 = vld [vmem:[#allocation62_spill] sm:$0xff] }
 0x3ad   : > { %1629 = vmatpush1.msra.mxu1 %v3714_v8  ;;  %1700 = vmatpush1.msra.mxu0 %v3715_v9 }
 0x3ae   : > { %1630 = vmatprep.subr.mxu1 %v3716_v10  ;;  %1701 = vmatprep.subr.mxu0 %v3717_v12 }
 0x3af   : > { %1631 = vmatpush1.msra.mxu1 %v3718_v13  ;;  %1664 = vmatprep.mubr.f32.mxu1 %v3719_v16 }
 0x3b0   : > { %1702 = vmatpush1.msra.mxu0 %v3720_v17  ;;  %1735 = vmatprep.mubr.f32.mxu0 %v3719_v16 }
 0x3b1   : > { %2223 = vmatprep.subr.bf16.mxu1 %v2406_v50 }
 0x450   : > { %v1484_v18 = vpop.f32.mrf.mxu1  ;;  %v1555_v24 = vpop.f32.mrf.mxu0 }
 0x451   : > { %v1560_v20 = vadd.f32 %v1484_v18, %v3721_v19  ;;  %v1562_v30 = vadd.f32 %v1555_v24, %v3724_v29 }
 0x452   : > { %v1486_v21 = vpop.f32.mrf.mxu1  ;;  %v1557_v26 = vpop.f32.mrf.mxu0 }
 0x453   : > { %v2155_v3 = vmul.f32 -1.442695, %v1560_v20  ;;  %v1561_v23 = vadd.f32 %v1486_v21, %v3722_v22  ;;  %v1563_v28 = vadd.f32 %v1557_v26, %v3723_v27 }
 0x455   : > { %2455 = vpow2.f32 %v2155_v3  ;;  %v2156_v25 = vmul.f32 -1.442695, %v1561_v23  ;;  %v2157_v31 = vmul.f32 -1.442695, %v1563_v28 }
 0x457   : > { %2457 = vpow2.f32 %v2156_v25 }
 0x458   : > { %2459 = vtanh.f32 %v1562_v30 }
 0x459   : > { %2461 = vpow2.f32 %v2157_v31 }
 0x462   : > { %v2456_v32 = vpop.eup %2455 }
 0x463   : > { %v1567_v33 = vadd.f32 1.0, %v2456_v32 }
 0x464   : > { %v2458_v34 = vpop.eup %2457 }
 0x465   : > { %2463 = vrcp.f32 %v1567_v33  ;;  %v1573_v35 = vadd.f32 1.0, %v2458_v34  ;;  %v2460_v54 = vpop.eup %2459 }
 0x466   : > { %v2462_v15 = vpop.eup %2461 }
 0x467   : > { %2465 = vrcp.f32 %v1573_v35  ;;  %v1580_v51 = vadd.f32 1.0, %v2462_v15 }
 0x469   : > { %2467 = vrcp.f32 %v1580_v51 }
 0x472   : > { %v2464_v39 = vpop.eup %2463 }
 0x473   : > { %v1584_v14 = vmul.f32 %v2464_v39, %v2460_v54 }
 0x474   : > { %v2466_v37 = vpop.eup %2465 }
 0x475   : > { %v1583_v57 = vmul.f32 %v2466_v37, %v1412_v11 }
 0x476   : > { %v2468_v58 = vpop.eup %2467 }
 0x477   : > { %v1585_v43 = vadd.f32 %v1584_v14, %v1583_v57 }
 0x479   : > { %2469 = vtanh.f32 %v1585_v43  ;;  %v1594_v46 = vmul.f32 %v1585_v43, %v976_v44 }
 0x486   : > { %v2470_v47 = vpop.eup %2469 }
 0x487   : > { %v1587_v52 = vmul.f32 %v2470_v47, %v2468_v58 }
 0x489   : > { %v1588_v53 = vpack.c.bf16 %v1587_v52, %v1587_v52  ;;  %v1593_v45 = vmul.f32 %v1587_v52, %v976_v44 }
 0x48b   : > { %1590 = vst [vmem:[#allocation4 + $0x8] sm:$0xf] %v1588_v53  ;;  %1665 = vmatmul.mubr.f32.vlgmr.msra.gmra.mxu1 %v1593_v45  ;;  %1736 = vmatmul.mubr.f32.vlgmr.msra.gmra.mxu0 %v1593_v45 }
 0x48c   : > { %2239 = vmatprep.mubr.bf16.mxu1 %v2405_v55  ;;  %2224 = vmatpush3.bf16.msra.mxu1 %v2406_v50 }
 0x48d   : > { %2225 = vmatprep.subr.bf16.mxu1 %v2407_v36 }
 0x490   : > { %2226 = vmatpush3.bf16.msra.mxu1 %v2407_v36 }
 0x491   : > { %2227 = vmatprep.subr.bf16.mxu1 %v2408_v40 }
 0x494   : > { %2228 = vmatpush3.bf16.msra.mxu1 %v2408_v40 }
 0x495   : > { %2229 = vmatprep.subr.bf16.mxu1 %v2409_v38 }
 0x498   : > { %2230 = vmatpush3.bf16.msra.mxu1 %v2409_v38 }
 0x499   : > { %2231 = vmatprep.subr.bf16.mxu1 %v2410_v41 }
 0x49c   : > { %2232 = vmatpush3.bf16.msra.mxu1 %v2410_v41 }
 0x49d   : > { %2233 = vmatprep.subr.bf16.mxu1 %v2411_v48 }
 0x4a0   : > { %2234 = vmatpush3.bf16.msra.mxu1 %v2411_v48 }
 0x4a1   : > { %2235 = vmatprep.subr.bf16.mxu1 %v2412_v49 }
 0x4a4   : > { %2236 = vmatpush3.bf16.msra.mxu1 %v2412_v49 }
 0x4a5   : > { %2237 = vmatprep.subr.bf16.mxu1 %v2413_v42 }
 0x4a8   : > { %2238 = vmatpush3.bf16.msra.mxu1 %v2413_v42 }
 0x54b   : > { %v1666_v59 = vpop.f32.mrf.mxu1  ;;  %v1737_v1 = vpop.f32.mrf.mxu0 }
 0x54c   : > { %v1742_v60 = vadd.f32 %v1666_v59, %v3725_v56  ;;  %v1744_v8 = vadd.f32 %v1737_v1, %v3728_v7 }
 0x54d   : > { %v1668_v61 = vpop.f32.mrf.mxu1  ;;  %v1739_v4 = vpop.f32.mrf.mxu0 }
 0x54e   : > { %v2158_v62 = vmul.f32 -1.442695, %v1742_v60  ;;  %v1743_v0 = vadd.f32 %v1668_v61, %v3726_v63  ;;  %v1745_v6 = vadd.f32 %v1739_v4, %v3727_v5 }
 0x550   : > { %2471 = vpow2.f32 %v2158_v62  ;;  %v2159_v2 = vmul.f32 -1.442695, %v1743_v0  ;;  %v2160_v9 = vmul.f32 -1.442695, %v1745_v6 }
 0x552   : > { %2473 = vpow2.f32 %v2159_v2 }
 0x553   : > { %2475 = vtanh.f32 %v1744_v8 }
 0x554   : > { %2477 = vpow2.f32 %v2160_v9 }
 0x55d   : > { %v2472_v10 = vpop.eup %2471 }
 0x55e   : > { %v1749_v12 = vadd.f32 1.0, %v2472_v10 }
 0x55f   : > { %v2474_v13 = vpop.eup %2473 }
 0x560   : > { %2479 = vrcp.f32 %v1749_v12  ;;  %v1755_v16 = vadd.f32 1.0, %v2474_v13  ;;  %v2476_v17 = vpop.eup %2475 }
 0x561   : > { %v2478_v18 = vpop.eup %2477 }
 0x562   : > { %2481 = vrcp.f32 %v1755_v16  ;;  %v1762_v3 = vadd.f32 1.0, %v2478_v18 }
 0x564   : > { %2483 = vrcp.f32 %v1762_v3 }
 0x56d   : > { %v2480_v19 = vpop.eup %2479 }
 0x56e   : > { %v1766_v20 = vmul.f32 %v2480_v19, %v2476_v17 }
 0x56f   : > { %v2482_v21 = vpop.eup %2481 }
 0x570   : > { %v1765_v22 = vmul.f32 %v2482_v21, %v1594_v46 }
 0x571   : > { %v2484_v24 = vpop.eup %2483 }
 0x572   : > { %v1767_v23 = vadd.f32 %v1766_v20, %v1765_v22 }
 0x574   : > { %2485 = vtanh.f32 %v1767_v23  ;;  %1774 = vst [vmem:[#allocation6] sm:$0xff] %v1767_v23  ;;  %1776 = vst [vmem:[#allocation18] sm:$0xff] %v1767_v23 }
 0x581   : > { %v2486_v25 = vpop.eup %2485 }
 0x582   : > { %v1769_v26 = vmul.f32 %v2486_v25, %v2484_v24 }
 0x584   : > { %v1770_v27 = vpack.c.bf16 %v1769_v26, %v1769_v26  ;;  %1773 = vst [vmem:[#allocation5] sm:$0xff] %v1769_v26  ;;  %1775 = vst [vmem:[#allocation16] sm:$0xff] %v1769_v26 }
 0x586   : > { %1772 = vst [vmem:[#allocation4 + $0xc] sm:$0xf] %v1770_v27 }
 0x58d   : > { %v2414_v28 = vld [vmem:[#allocation4 + $0x8] sm:$0xff]  }
 0x58e   : > { %2240 = vmatmul.mubr.bf16.vlgmr.msra.gmra.mxu1 %v2414_v28 }
 0x58f   : > { %2606 = shalt.err (!%p2603_p4)
}
 0x590   : > { %p3730_p9 = pmov %p3729_p8  ;;  %s2733_s14 = smov [#allocation18]  }
 0x591   : > { %s1956_s5 = sshll.u32 %s2733_s14, 4  ;;  %p3731_p12 = pmov %p3729_p8  ;;  %s1957_s5 = int_to_ptr.vmem [resolvable:$true] %s1956_s5 }
 0x592   : > { %2259 = dma.vmem_to_hbm [thread:$0]  (%p3730_p9), %s1946_s23, 128, %s3538_s10, [#allocation17]  }
 0x593   : > { %s2617_s30 = scalar_lea.vmem %s1957_s5, 128  ;;  %p2624_p3 = scmp.lt.s32.totalorder %s1957_s5, %s1957_s5 }
 0x594   : > { %p2618_p2 = scmp.ne.s32.totalorder %s1957_s5, %s2617_s30  ;;  %p2625_p11 = scmp.lt.s32.totalorder %s2617_s30, %s2617_s30 }
 0x596   : > { %p2619_p0 = pnand %p2618_p2, %p3731_p12  ;;  %p2626_p8 = por %p2625_p11, %p2624_p3 }
 0x598   : > { %p2620_p13 = pneg %p2619_p0 }
 0x59a   : > { %p2627_p1 = pnand %p2626_p8, %p2620_p13 }
 0x59c   : > { %2630 = shalt.err (!%p2627_p1)
}
 0x59d   : > { %p3732_p5 = pmov %p3730_p9  ;;  %v2161_v29 = vld [vmem:[%s3536_s8] ss:$0 sm:$0xff]  ;;  %s2182_s25 = sshll.u32 %s2818_s21, 9 }
 0x59e   : > { %s1931_s29 = sshll.u32 %s2964_s26, 4  ;;  %s3477_s24 = scalar_lea.hbm %s3537_s9, %s2182_s25  ;;  %s3479_s29 = int_to_ptr.vmem [resolvable:$true] %s1931_s29 }
 0x59f   : > { %2261 = dma.vmem_to_hbm [thread:$0]  (%p3732_p5), %s1957_s5, 128, %s3539_s11, [#allocation17]  }
 0x5a0   : > { %s1918_s27 = scalar_lea.sflag [#allocation9], %s2939_s7  ;;  %s2641_s14 = scalar_lea.vmem %s3479_s29, 512 }
 0x5a1   : > { %p2642_p6 = scmp.ne.s32.totalorder %s3479_s29, %s2641_s14  ;;  %p3733_p10 = scmp.ne.s32.totalorder %s3616_s28, 0 }
 0x5a2   : > { %s2734_s5 = smov [#allocation15]  }
 0x5a3   : > { %p2643_p7 = pnand %p2642_p6, %p3733_p10  ;;  %s2645_s30 = sshll.u32 %s2734_s5, 4  ;;  %s2646_s30 = int_to_ptr.vmem [resolvable:$false] %s2645_s30 }
 0x5a4   : > { %s2647_s12 = scalar_lea.vmem %s2646_s30, 1024  ;;  %p2648_p9 = scmp.lt.s32.totalorder %s3479_s29, %s2646_s30 }
 0x5a5   : > { %p2644_p4 = pneg %p2643_p7  ;;  %p2649_p2 = scmp.lt.s32.totalorder %s2647_s12, %s2641_s14 }
 0x5a7   : > { %p2650_p12 = por %p2649_p2, %p2648_p9 }
 0x5a9   : > { %p2651_p0 = pnand %p2650_p12, %p2644_p4 }
 0x64e   : > { %v2241_v30 = vpop.f32.mrf.mxu1 }
 0x64f   : > { %v1907_v31 = vadd.f32 %v2241_v30, %v2161_v29 }
 0x650   : > { %v1898_v32 = vpop.f32.mrf.mxu1 }
 0x651   : > { %1915 = vst [vmem:[%s2964_s26 + $0x10] sm:$0xff] %v1907_v31  ;;  %v1899_v33 = vadd.f32 %v2161_v29, %v1898_v32 }
 0x652   : > { %v2242_v34 = vpop.f32.mrf.mxu1 }
 0x653   : > { %1913 = vst [vmem:[%s2964_s26] sm:$0xff] %v1899_v33  ;;  %v1910_v35 = vadd.f32 %v2242_v34, %v2161_v29 }
 0x654   : > { %v1901_v54 = vpop.f32.mrf.mxu1 }
 0x655   : > { %1916 = vst [vmem:[%s2964_s26 + $0x18] sm:$0xff] %v1910_v35  ;;  %v1902_v15 = vadd.f32 %v2161_v29, %v1901_v54 }
 0x657   : > { %1914 = vst [vmem:[%s2964_s26 + $0x8] sm:$0xff] %v1902_v15 }
 0x658   : > { %2654 = shalt.err (!%p2651_p0)
}
 0x659   : > { %s2655_s26 = scalar_lea.hbm %s3477_s24, 512  ;;  %s2659_s4 = scalar_lea.hbm %s3537_s9, 1024 }
 0x65a   : > { %p2656_p13 = scmp.ne.s32.totalorder %s3477_s24, %s2655_s26  ;;  %p2660_p8 = scmp.lt.s32.totalorder %s3477_s24, %s3537_s9 }
 0x65b   : > { %p2661_p1 = scmp.lt.s32.totalorder %s2659_s4, %s2655_s26 }
 0x65c   : > { %p2657_p3 = pnand %p2656_p13, %p3733_p10 }
 0x65d   : > { %p2662_p5 = por %p2661_p1, %p2660_p8 }
 0x65e   : > { %p2658_p11 = pneg %p2657_p3 }
 0x660   : > { %p2663_p6 = pnand %p2662_p5, %p2658_p11 }
 0x662   : > { %2666 = shalt.err (!%p2663_p6)
}
 0x663   : > { %s2735_s15 = smov 128   ;;  %s2736_s14 = smov 8  }
 0x664   : > { %2257 = dma.vmem_to_hbm [thread:$0]  (%p3733_p10), %s3479_s29, 512, %s3477_s24, %s1918_s27, %s2735_s15, %s2735_s15, %s2736_s14  }
 0x665   : > { %p3734_p7 = scmp.eq.s32.totalorder %s2818_s21, 1 }
 0x667   : > { %2696 = dma.done.wait (%p3734_p7), [#allocation17], 256   ;;  %p3735_p4 = pmov %p3734_p7 }
 0x669   : > { %2698 = vsyncadd (%p3735_p4), [#allocation17], 4294967040 }
 0x66a PF: > { %s3736_s5 = sld [smem:[#allocation24_spill]]  ;;  %s1976_s30 = sand.u32 1, %s2705_s17  }
 0x66b   : > { %p3738_p2 = scmp.ge.s32.totalorder %s2717_s20, 2  ;;  %s1977_s12 = scalar_lea.sflag [#allocation9], %s1976_s30 }
 0x670   : > { %p3737_p9 = scmp.ne.s32.totalorder %s3736_s5, 0 }
 0x672   : > { %p2282_p12 = pnand %p3738_p2, %p3737_p9 }
 0x674   : > { %p2283_p0 = pneg %p2282_p12 }
 0x676   : > { %2700 = dma.done.wait (%p2283_p0), %s1977_s12, 512  }
 0x677   : > { %2702 = vsyncadd (%p2283_p0), %s1977_s12, 4294966784  ;;  %s3739_s28 = sld [smem:[#allocation25_spill]]  ;;  %p28_p10 = scmp.ge.s32.totalorder %s2881_s22, 4  }
 0x678   : > { %s3740_s17 = smov %s2709_s18  ;;  %s3741_s18 = smov %s2713_s19 }
 0x679   : > { %s3743_s20 = smov %s2881_s22  ;;  %30 = sbr.rel (!%p28_p10) target bundleno = 12 (0xc), region = 145 }
 0x67d   : > { %s3742_s19 = smov %s3739_s28 }
 0x67e   :  { %1982 = vsyncpa [#allocation8], 1 }
 0x67f   :  { %1984 = vsyncpa [#allocation8 + $0x1], 1 }
 0x680   :  { %1985 = vsyncpa [#allocation11], 1 }
 0x681   :  { %1986 = vsyncpa [#allocation14], 1 }
 0x682   :  { %1987 = vsyncpa [#allocation9], 1 }
 0x683   :  { %1989 = vsyncpa [#allocation9 + $0x1], 1 }
 0x684   :  { %1990 = vsyncpa [#allocation17], 1 }

</bundles_post_ra>
